<compile_context>
chip_gen: v7x
topology: tpu7x:2x2x1
jax: 0.10.0
libtpu: 0.0.40
codegen_flags: <defaults>
</compile_context>

<pallas_src>
import math

import jax
import jax.numpy as jnp
from jax import lax
from jax.experimental import pallas as pl
from jax.experimental.pallas import tpu as pltpu

_MASK_MIN = -1e30            # finite "minus infinity": flash blocks never NaN
_VMEM_LIMIT = 64 * 1024 * 1024


# ----------------------------------------------------------------------------
# small helpers
# ----------------------------------------------------------------------------
def _round_up(n, m):
    return ((n + m - 1) // m) * m


def _pick_tile(n, prefs):
    """Pick a tile for dim `n` (prefs largest-first); returns (tile, padded_n)."""
    for p in prefs:
        if n >= p and n % p == 0:
            return p, n
    if n <= prefs[-1]:
        return n, n                      # small dim: single full block
    p = prefs[-1]
    return p, _round_up(n, p)            # ragged: pad to a multiple of smallest pref


def _pad_axis(x, axis, target):
    if x.shape[axis] == target:
        return x
    pads = [(0, 0)] * x.ndim
    pads[axis] = (0, target - x.shape[axis])
    return jnp.pad(x, pads)


def _exp_dtype_for_device(compute_dtype):
    """bf16 exp on v6e/v7x (bf16 EUP); f32 exp elsewhere (v5e and older)."""
    if jnp.dtype(compute_dtype) == jnp.dtype(jnp.float32):
        return jnp.float32
    try:
        kind = jax.devices()[0].device_kind.lower()
    except Exception:
        kind = ""
    if ("v6" in kind) or ("v7" in kind):
        return compute_dtype
    return jnp.float32


# ----------------------------------------------------------------------------
# Kernel 1: tiled Linear  y = x @ W^T + b   (PyTorch nn.Linear convention)
# Weights are pre-transposed (IN, OUT) in the wrapper; inputs are pre-cast to
# the compute dtype; the IN axis is a grid axis with an f32 VMEM accumulator.
# ----------------------------------------------------------------------------
def _linear_kernel(x_ref, w_ref, b_ref, o_ref, acc_ref):
    kk = pl.program_id(2)

    @pl.when(kk == 0)
    def _():
        acc_ref[...] = jnp.zeros_like(acc_ref)

    acc_ref[...] += jnp.dot(x_ref[...], w_ref[...],
                            preferred_element_type=jnp.float32)

    @pl.when(kk == pl.num_programs(2) - 1)
    def _():
        o_ref[...] = (acc_ref[...] + b_ref[...]).astype(o_ref.dtype)


def pallas_linear(x2d, weight, bias, *, compute_dtype=jnp.bfloat16,
                  out_dtype=None):
    if out_dtype is None:
        out_dtype = compute_dtype
    M, IN = x2d.shape
    OUT = weight.shape[0]

    # Cast BEFORE pallas_call so HBM traffic and VMEM tiles are narrow; the
    # one-time weight transpose keeps the kernel a plain dim-0 contraction.
    x2d = x2d.astype(compute_dtype)
    wt = weight.T.astype(compute_dtype)            # (IN, OUT)
    b = bias.astype(jnp.float32).reshape(1, OUT)

    Mp = _round_up(M, 8)                           # avoid sublane-unaligned tiles
    tm, Mp = _pick_tile(Mp, (512, 256, 128))
    tn, OUTp = _pick_tile(OUT, (512, 256, 128))
    tkk, INp = _pick_tile(IN, (512, 256, 128))

    x2d = _pad_axis(_pad_axis(x2d, 0, Mp), 1, INp)
    wt = _pad_axis(_pad_axis(wt, 0, INp), 1, OUTp)
    b = _pad_axis(b, 1, OUTp)

    grid = (Mp // tm, OUTp // tn, INp // tkk)
    out = pl.pallas_call(
        _linear_kernel,
        out_shape=jax.ShapeDtypeStruct((Mp, OUTp), out_dtype),
        grid_spec=pltpu.PrefetchScalarGridSpec(
            num_scalar_prefetch=0,
            grid=grid,
            in_specs=[
                pl.BlockSpec((tm, tkk), lambda i, j, kk: (i, kk)),
                pl.BlockSpec((tkk, tn), lambda i, j, kk: (kk, j)),
                pl.BlockSpec((1, tn), lambda i, j, kk: (0, j)),
            ],
            out_specs=pl.BlockSpec((tm, tn), lambda i, j, kk: (i, j)),
            scratch_shapes=[pltpu.VMEM((tm, tn), jnp.float32)],
        ),
        compiler_params=pltpu.CompilerParams(
            dimension_semantics=("parallel", "parallel", "arbitrary"),
            vmem_limit_bytes=_VMEM_LIMIT),
    )(x2d, wt, b)

    if (Mp, OUTp) != (M, OUT):
        out = out[:M, :OUT]
    return out


# ----------------------------------------------------------------------------
# Kernel 2: head-fused scaled-dot-product attention, flash/online softmax
# grid = (batch, q-tile, kv-block); Q relayout hoisted into a VMEM scratch.
# ----------------------------------------------------------------------------
def _make_sdpa_kernel(num_heads, head_dim, compute_dtype, exp_dtype,
                      has_mask, sk_valid, needs_tail_mask):
    def kernel(*refs):
        if has_mask:
            q_ref, k_ref, v_ref, m_ref, o_ref, q_sc, m_sc, l_sc, acc_sc = refs
        else:
            q_ref, k_ref, v_ref, o_ref, q_sc, m_sc, l_sc, acc_sc = refs
            m_ref = None

        kv_i = pl.program_id(2)
        tq = q_ref.shape[0]
        tk = k_ref.shape[0]

        @pl.when(kv_i == 0)
        def _():
            # Q relayout/cast hoisted out of the KV loop: done once per
            # (batch, q-tile).  1/sqrt(head_dim) already folded into q_proj.
            q_sc[...] = jnp.transpose(
                q_ref[...].reshape(tq, num_heads, head_dim),
                (1, 0, 2)).astype(compute_dtype)
            m_sc[...] = jnp.full_like(m_sc, -jnp.inf)
            l_sc[...] = jnp.zeros_like(l_sc)
            acc_sc[...] = jnp.zeros_like(acc_sc)

        # (tk, E) VMEM tile -> (H, tk, hd): head split done on-chip, never in HBM.
        k = jnp.transpose(k_ref[...].reshape(tk, num_heads, head_dim),
                          (1, 0, 2)).astype(compute_dtype)
        v = jnp.transpose(v_ref[...].reshape(tk, num_heads, head_dim),
                          (1, 0, 2)).astype(compute_dtype)

        # QK^T for all heads of this (batch, q-tile) in one batched MXU call.
        s = jnp.einsum("hqd,hkd->hqk", q_sc[...], k,
                       preferred_element_type=jnp.float32)
        if has_mask:
            s = s + m_ref[...].astype(jnp.float32)      # (Hm, Qm|tq, tk) additive
        if needs_tail_mask:
            col = kv_i * tk + lax.broadcasted_iota(jnp.int32, s.shape, 2)
            s = jnp.where(col < sk_valid, s, _MASK_MIN)

        # online (flash-style) softmax across KV blocks
        m_prev = m_sc[...]
        m_new = jnp.maximum(m_prev, jnp.max(s, axis=-1, keepdims=True))
        alpha = jnp.exp(m_prev - m_new)
        p = jnp.exp((s - m_new).astype(exp_dtype))      # bf16 EUP on v6e/v7x
        l_sc[...] = alpha * l_sc[...] + jnp.sum(p, axis=-1, keepdims=True,
                                                dtype=jnp.float32)
        acc_sc[...] = alpha * acc_sc[...] + jnp.einsum(
            "hqk,hkd->hqd", p.astype(compute_dtype), v,
            preferred_element_type=jnp.float32)
        m_sc[...] = m_new

        @pl.when(kv_i == pl.num_programs(2) - 1)
        def _():
            # exact reciprocal: runs only once per (batch, q-tile)
            inv_l = pl.reciprocal(l_sc[...], approx=False)
            out = acc_sc[...] * inv_l                   # (H, tq, hd) f32
            # (H, tq, hd) -> (tq, H*hd) = (tq, E): lane-dense output tile.
            o_ref[...] = jnp.transpose(out, (1, 0, 2)).reshape(
                tq, num_heads * head_dim).astype(o_ref.dtype)

    return kernel


def _normalize_mask(attn_mask, key_padding_mask, B, H, Sk, mask_dtype):
    """Return (mask4, Bm, Hm, Qm) additive mask of shape (Bm, Hm, Qm, Sk), or None.

    Bool masks (True == masked) become a large negative additive bias.  Float
    masks are clamped at _MASK_MIN so a fully masked row yields uniform
    attention (average of V) instead of NaN -- a deliberate, documented
    difference from a strict softmax over an all -inf row.
    """
    m4 = None
    if attn_mask is not None:
        m = jnp.asarray(attn_mask)
        if m.dtype == jnp.bool_:
            m = jnp.where(m, jnp.float32(_MASK_MIN), jnp.float32(0.0))
        m = jnp.maximum(m.astype(jnp.float32), _MASK_MIN)
        if m.ndim == 2:                               # shared (Sq|1, Sk)
            m = m[None]
        if m.ndim != 3:
            raise ValueError("attn_mask must be 2D or 3D (torch layout)")
        if m.shape[0] == 1:                           # shared over batch*heads
            m4 = m.reshape(1, 1, m.shape[1], m.shape[2])
        elif m.shape[0] == B * H:                     # per-(batch, head)
            m4 = m.reshape(B, H, m.shape[1], m.shape[2])
        else:
            raise ValueError("attn_mask leading dim must be 1 or batch*heads")

    if key_padding_mask is not None:
        kpm = jnp.asarray(key_padding_mask)
        if kpm.dtype != jnp.bool_:
            kpm = kpm != 0
        kpm = jnp.where(kpm.reshape(B, 1, 1, Sk), jnp.float32(_MASK_MIN),
                        jnp.float32(0.0))
        if m4 is None:
            m4 = kpm                                  # natural (B,1,1,Sk) shape
        else:
            # TODO(synk): merging inflates a shared attn_mask to per-batch; pass
            # both masks separately if this path ever dominates HBM traffic.
            m4 = jnp.maximum(m4 + kpm, _MASK_MIN)

    if m4 is None:
        return None
    Bm, Hm, Qm, _ = m4.shape
    return m4.astype(mask_dtype), Bm, Hm, Qm


def pallas_sdpa(q, k, v, num_heads, attn_mask=None, key_padding_mask=None, *,
                compute_dtype=jnp.bfloat16, out_dtype=None):
    if out_dtype is None:
        out_dtype = compute_dtype
    B, Sq, E = q.shape
    _, Sk, _ = k.shape
    H = num_heads
    hd = E // H
    assert H * hd == E, "emb_dim must be divisible by num_heads"

    exp_dtype = _exp_dtype_for_device(compute_dtype)

    q = q.astype(compute_dtype)
    k = k.astype(compute_dtype)
    v = v.astype(compute_dtype)

    # 256-aligned tiles preferred (v6e/v7x MXU); 128 fallback; ragged dims are
    # zero-padded (KV tail handled by the in-kernel iota mask).
    tq, Sq_pad = _pick_tile(Sq, (256, 128))
    tk, Sk_pad = _pick_tile(Sk, (512, 256, 128))

    if Sq_pad != Sq:
        q = _pad_axis(q, 1, Sq_pad)
    if Sk_pad != Sk:
        k = _pad_axis(k, 1, Sk_pad)
        v = _pad_axis(v, 1, Sk_pad)

    mask_info = _normalize_mask(attn_mask, key_padding_mask, B, H, Sk,
                                compute_dtype)
    has_mask = mask_info is not None

    in_specs = [
        pl.BlockSpec((None, tq, E), lambda b, qi, ki: (b, qi, 0)),  # Q resident over KV
        pl.BlockSpec((None, tk, E), lambda b, qi, ki: (b, ki, 0)),
        pl.BlockSpec((None, tk, E), lambda b, qi, ki: (b, ki, 0)),
    ]
    args = [q, k, v]

    if has_mask:
        mask4, Bm, Hm, Qm = mask_info
        if Qm > 1 and Sq_pad != Sq:
            mask4 = _pad_axis(mask4, 2, Sq_pad)
            Qm = Sq_pad
        if Sk_pad != Sk:
            mask4 = _pad_axis(mask4, 3, Sk_pad)
        if Qm > 1:
            mq_blk = tq
            if Bm > 1:
                midx = lambda b, qi, ki: (b, 0, qi, ki)
            else:
                midx = lambda b, qi, ki: (0, 0, qi, ki)
        else:
            mq_blk = 1
            if Bm > 1:
                midx = lambda b, qi, ki: (b, 0, 0, ki)
            else:
                midx = lambda b, qi, ki: (0, 0, 0, ki)
        in_specs.append(pl.BlockSpec((None, Hm, mq_blk, tk), midx))
        args.append(mask4)

    grid = (B, Sq_pad // tq, Sk_pad // tk)

    out = pl.pallas_call(
        _make_sdpa_kernel(H, hd, compute_dtype, exp_dtype, has_mask, Sk,
                          Sk_pad != Sk),
        out_shape=jax.ShapeDtypeStruct((B, Sq_pad, E), out_dtype),
        grid_spec=pltpu.PrefetchScalarGridSpec(
            num_scalar_prefetch=0,
            grid=grid,
            in_specs=in_specs,
            out_specs=pl.BlockSpec((None, tq, E), lambda b, qi, ki: (b, qi, 0)),
            scratch_shapes=[
                pltpu.VMEM((H, tq, hd), compute_dtype),  # hoisted, relaid-out Q
                pltpu.VMEM((H, tq, 1), jnp.float32),     # running max
                pltpu.VMEM((H, tq, 1), jnp.float32),     # running denominator
                pltpu.VMEM((H, tq, hd), jnp.float32),    # running numerator
            ],
        ),
        compiler_params=pltpu.CompilerParams(
            dimension_semantics=("parallel", "parallel", "arbitrary"),
            vmem_limit_bytes=_VMEM_LIMIT),
    )(*args)

    if Sq_pad != Sq:
        out = out[:, :Sq, :]
    return out


# ----------------------------------------------------------------------------
# relMultiheadAttention forward (Pallas-backed)
# ----------------------------------------------------------------------------
def rel_multihead_attention_forward(params, q, k, v, num_heads, attn_mask=None,
                                    key_padding_mask=None,
                                    compute_dtype=jnp.bfloat16):
    B, Sq, E = q.shape
    hd = E // num_heads
    scale = jnp.float32(1.0 / math.sqrt(hd))

    def proj(x, w, b):
        y = pallas_linear(x.reshape(-1, E), w, b, compute_dtype=compute_dtype,
                          out_dtype=compute_dtype)
        return y.reshape(x.shape[0], x.shape[1], E)

    # 1/sqrt(head_dim) folded into the q projection (wrapper-side, amortized).
    qp = proj(q, params["q_w"] * scale, params["q_b"] * scale)
    kp = proj(k, params["k_w"], params["k_b"])
    vp = proj(v, params["v_w"], params["v_b"])

    # Head split/merge happens inside the SDPA kernel on VMEM tiles; no
    # (B*H, S, hd) transposed copies ever hit HBM.
    attn_out = pallas_sdpa(qp, kp, vp, num_heads, attn_mask=attn_mask,
                           key_padding_mask=key_padding_mask,
                           compute_dtype=compute_dtype,
                           out_dtype=compute_dtype)

    out = pallas_linear(attn_out.reshape(-1, E), params["o_w"], params["o_b"],
                        compute_dtype=compute_dtype, out_dtype=jnp.float32)
    return out.reshape(B, Sq, E)


# ----------------------------------------------------------------------------
# Pure-JAX reference for verification (f32, HIGHEST matmul precision)
# ----------------------------------------------------------------------------
def _reshape_to_batches(x, num_heads):
    B, S, E = x.shape
    hd = E // num_heads
    return (x.reshape(B, S, num_heads, hd).transpose(0, 2, 1, 3)
             .reshape(B * num_heads, S, hd))


def _reshape_from_batches(x, num_heads):
    BH, S, hd = x.shape
    B = BH // num_heads
    return (x.reshape(B, num_heads, S, hd).transpose(0, 2, 1, 3)
             .reshape(B, S, num_heads * hd))


def reference_forward(params, q, k, v, num_heads, attn_mask=None,
                      key_padding_mask=None):
    B, Sq, E = q.shape
    Sk = k.shape[1]
    hd = E // num_heads
    hi = jax.lax.Precision.HIGHEST

    def lin(x, w, b):
        return jnp.einsum("...i,oi->...o", x, w, precision=hi) + b

    qh = _reshape_to_batches(lin(q, params["q_w"], params["q_b"]), num_heads)
    kh = _reshape_to_batches(lin(k, params["k_w"], params["k_b"]), num_heads)
    vh = _reshape_to_batches(lin(v, params["v_w"], params["v_b"]), num_heads)

    attn = jnp.einsum("bqd,bkd->bqk", qh / math.sqrt(hd), kh, precision=hi)
    if attn_mask is not None:
        m = jnp.asarray(attn_mask)
        if m.dtype == jnp.bool_:
            m = jnp.where(m, jnp.float32(_MASK_MIN), jnp.float32(0.0))
        attn = attn + m.astype(jnp.float32)
    if key_padding_mask is not None:
        kpm = jnp.asarray(key_padding_mask).reshape(B, 1, 1, Sk)
        kpm = jnp.broadcast_to(kpm, (B, num_heads, 1, Sk)).reshape(
            B * num_heads, 1, Sk)
        attn = jnp.where(kpm, jnp.float32(_MASK_MIN), attn)
    attn = jax.nn.softmax(attn, axis=-1)
    out = jnp.einsum("bqk,bkd->bqd", attn, vh, precision=hi)
    out = _reshape_from_batches(out, num_heads)
    return lin(out, params["o_w"], params["o_b"])


# ----------------------------------------------------------------------------
# Deterministic parameter init (nn.Linear-style uniform(-1/sqrt(in), 1/sqrt(in)))
# ----------------------------------------------------------------------------
def init_params(key, emb_dim):
    bound = 1.0 / math.sqrt(emb_dim)
    keys = jax.random.split(key, 8)
    params = {}
    for i, n in enumerate(["q", "k", "v", "o"]):
        params[f"{n}_w"] = jax.random.uniform(
            keys[2 * i], (emb_dim, emb_dim), jnp.float32, -bound, bound)
        params[f"{n}_b"] = jax.random.uniform(
            keys[2 * i + 1], (emb_dim,), jnp.float32, -bound, bound)
    return params


if __name__ == "__main__":
    B, S, E, H = 2, 8, 32, 4

    key = jax.random.PRNGKey(0)
    kparam, kq, kk, kvk, km = jax.random.split(key, 5)
    params = init_params(kparam, E)

    q = jax.random.normal(kq, (B, S, E), jnp.float32)
    k = jax.random.normal(kk, (B, S, E), jnp.float32)
    v = jax.random.normal(kvk, (B, S, E), jnp.float32)

    # shared additive causal mask, a per-(batch,head) additive mask, and a
    # boolean key-padding mask (last two keys of batch 1 masked).
    causal = jnp.where(jnp.triu(jnp.ones((S, S), jnp.bool_), k=1),
                       jnp.float32(-1e9), jnp.float32(0.0))
    bh_mask = (-5.0 * jax.random.bernoulli(km, 0.3, (B * H, S, S))).astype(
        jnp.float32)
    kpm = jnp.zeros((B, S), jnp.bool_).at[1, -2:].set(True)

    fwd = jax.jit(rel_multihead_attention_forward,
                  static_argnames=("num_heads", "compute_dtype"))

    # Tolerance dominated by bf16 MXU inputs / bf16 exp on the online softmax.
    checks = [
        (None, None, jnp.float32, 5e-2),
        (causal, None, jnp.float32, 5e-2),
        (bh_mask, None, jnp.bfloat16, 5e-2),
        (None, kpm, jnp.bfloat16, 5e-2),
        (bh_mask, kpm, jnp.bfloat16, 5e-2),
        (None, None, jnp.bfloat16, 5e-2),
    ]
    for mask, kpmask, cdt, tol in checks:
        out = fwd(params, q, k, v, num_heads=H, attn_mask=mask,
                  key_padding_mask=kpmask, compute_dtype=cdt)
        out = jax.block_until_ready(out)
        ref = reference_forward(params, q, k, v, H, attn_mask=mask,
                                key_padding_mask=kpmask)
        assert out.shape == (B, S, E)
        err = float(jnp.max(jnp.abs(out - ref)))
        assert err <= tol, (
            f"mask={'yes' if mask is not None else 'no'} "
            f"kpm={'yes' if kpmask is not None else 'no'} dtype={cdt}: "
            f"max abs err {err} > {tol}")

    print("KERNEL_OK")
</pallas_src>

<mosaic_0001>
module attributes {stable_mosaic.version = 11 : i64} {
  func.func @_linear_kernel(%arg0: i32, %arg1: i32, %arg2: i32, %arg3: memref<16x32xf32, #tpu.memory_space<vmem>>, %arg4: memref<32x32xf32, #tpu.memory_space<vmem>>, %arg5: memref<1x32xf32, #tpu.memory_space<vmem>>, %arg6: memref<16x32xf32, #tpu.memory_space<vmem>>, %arg7: memref<16x32xf32, #tpu.memory_space<vmem>>) attributes {dimension_semantics = [#tpu.dimension_semantics<parallel>, #tpu.dimension_semantics<parallel>, #tpu.dimension_semantics<arbitrary>], iteration_bounds = array<i64: 1, 1, 1>, scalar_prefetch = 0 : i64, scratch_operands = 1 : i64, tpu.core_type = #tpu.core_type<tc>, window_params = [{transform_indices = @transform_0, window_bounds = array<i64: 16, 32>}, {transform_indices = @transform_1, window_bounds = array<i64: 32, 32>}, {transform_indices = @transform_2, window_bounds = array<i64: 1, 32>}, {transform_indices = @transform_3, window_bounds = array<i64: 16, 32>}]} {
    %c0_i32 = arith.constant 0 : i32
    %0 = arith.cmpi eq, %arg2, %c0_i32 : i32
    %1 = arith.extui %0 : i1 to i32
    %c0_i32_0 = arith.constant 0 : i32
    %2 = arith.cmpi ne, %1, %c0_i32_0 : i32
    scf.if %2 {
      %cst_10 = arith.constant 0.000000e+00 : f32
      %12 = vector.broadcast %cst_10 : f32 to vector<16x32xf32>
      %c0_11 = arith.constant 0 : index
      %c0_12 = arith.constant 0 : index
      %13 = vector.load %arg7[%c0_11, %c0_12] : memref<16x32xf32, #tpu.memory_space<vmem>>, vector<16x32xf32>
      tpu.vector_store %arg7[%c0_11, %c0_12], %12 {strides = array<i32>} : memref<16x32xf32, #tpu.memory_space<vmem>>, vector<16x32xf32>,
    } else {
    }
    %c0 = arith.constant 0 : index
    %c0_1 = arith.constant 0 : index
    %3 = vector.load %arg7[%c0, %c0_1] : memref<16x32xf32, #tpu.memory_space<vmem>>, vector<16x32xf32>
    %c0_2 = arith.constant 0 : index
    %c0_3 = arith.constant 0 : index
    %4 = vector.load %arg3[%c0_2, %c0_3] : memref<16x32xf32, #tpu.memory_space<vmem>>, vector<16x32xf32>
    %c0_4 = arith.constant 0 : index
    %c0_5 = arith.constant 0 : index
    %5 = vector.load %arg4[%c0_4, %c0_5] : memref<32x32xf32, #tpu.memory_space<vmem>>, vector<32x32xf32>
    %cst = arith.constant dense<0.000000e+00> : vector<16x32xf32>
    %6 = tpu.matmul %4, %5, %cst {dimension_numbers = #tpu.dot_dimension_numbers<[1], [0], [0], [1], [0, 0, 1, 1], [], []>} : vector<16x32xf32>, vector<32x32xf32>, vector<16x32xf32> -> vector<16x32xf32>
    %7 = arith.addf %3, %6 : vector<16x32xf32>
    %c0_6 = arith.constant 0 : index
    %c0_7 = arith.constant 0 : index
    %8 = vector.load %arg7[%c0_6, %c0_7] : memref<16x32xf32, #tpu.memory_space<vmem>>, vector<16x32xf32>
    tpu.vector_store %arg7[%c0_6, %c0_7], %7 {strides = array<i32>} : memref<16x32xf32, #tpu.memory_space<vmem>>, vector<16x32xf32>,
    %c0_i32_8 = arith.constant 0 : i32
    %9 = arith.cmpi eq, %arg2, %c0_i32_8 : i32
    %10 = arith.extui %9 : i1 to i32
    %c0_i32_9 = arith.constant 0 : i32
    %11 = arith.cmpi ne, %10, %c0_i32_9 : i32
    scf.if %11 {
      %c0_10 = arith.constant 0 : index
      %c0_11 = arith.constant 0 : index
      %12 = vector.load %arg7[%c0_10, %c0_11] : memref<16x32xf32, #tpu.memory_space<vmem>>, vector<16x32xf32>
      %c0_12 = arith.constant 0 : index
      %c0_13 = arith.constant 0 : index
      %13 = vector.load %arg5[%c0_12, %c0_13] : memref<1x32xf32, #tpu.memory_space<vmem>>, vector<1x32xf32>
      %14 = vector.broadcast %13 : vector<1x32xf32> to vector<16x32xf32>
      %15 = arith.addf %12, %14 : vector<16x32xf32>
      %c0_14 = arith.constant 0 : index
      %c0_15 = arith.constant 0 : index
      %16 = vector.load %arg6[%c0_14, %c0_15] : memref<16x32xf32, #tpu.memory_space<vmem>>, vector<16x32xf32>
      tpu.vector_store %arg6[%c0_14, %c0_15], %15 {strides = array<i32>} : memref<16x32xf32, #tpu.memory_space<vmem>>, vector<16x32xf32>,
    } else {
    }
    return
  }
  func.func @transform_0(%arg0: i32, %arg1: i32, %arg2: i32) -> (i32, i32) {
    %c0_i32 = arith.constant 0 : i32
    return %arg0, %arg2 : i32, i32
  }
  func.func @transform_1(%arg0: i32, %arg1: i32, %arg2: i32) -> (i32, i32) {
    %c0_i32 = arith.constant 0 : i32
    return %arg2, %arg1 : i32, i32
  }
  func.func @transform_2(%arg0: i32, %arg1: i32, %arg2: i32) -> (i32, i32) {
    %c0_i32 = arith.constant 0 : i32
    %c0_i32_0 = arith.constant 0 : i32
    return %c0_i32, %arg1 : i32, i32
  }
  func.func @transform_3(%arg0: i32, %arg1: i32, %arg2: i32) -> (i32, i32) {
    %c0_i32 = arith.constant 0 : i32
    return %arg0, %arg1 : i32, i32
  }
}

module attributes {stable_mosaic.version = 11 : i64} {
  func.func @kernel(%arg0: i32, %arg1: i32, %arg2: i32, %arg3: memref<1x8x32xf32, #tpu.memory_space<vmem>>, %arg4: memref<1x8x32xf32, #tpu.memory_space<vmem>>, %arg5: memref<1x8x32xf32, #tpu.memory_space<vmem>>, %arg6: memref<1x8x32xf32, #tpu.memory_space<vmem>>, %arg7: memref<4x8x8xf32, #tpu.memory_space<vmem>>, %arg8: memref<4x8x1xf32, #tpu.memory_space<vmem>>, %arg9: memref<4x8x1xf32, #tpu.memory_space<vmem>>, %arg10: memref<4x8x8xf32, #tpu.memory_space<vmem>>) attributes {dimension_semantics = [#tpu.dimension_semantics<parallel>, #tpu.dimension_semantics<parallel>, #tpu.dimension_semantics<arbitrary>], iteration_bounds = array<i64: 2, 1, 1>, scalar_prefetch = 0 : i64, scratch_operands = 4 : i64, tpu.core_type = #tpu.core_type<tc>, window_params = [{transform_indices = @transform_0, window_bounds = array<i64: 1, 8, 32>}, {transform_indices = @transform_1, window_bounds = array<i64: 1, 8, 32>}, {transform_indices = @transform_2, window_bounds = array<i64: 1, 8, 32>}, {transform_indices = @transform_3, window_bounds = array<i64: 1, 8, 32>}]} {
    %c0_i32 = arith.constant 0 : i32
    %0 = arith.cmpi eq, %arg2, %c0_i32 : i32
    %1 = arith.extui %0 : i1 to i32
    %c0_i32_0 = arith.constant 0 : i32
    %2 = arith.cmpi ne, %1, %c0_i32_0 : i32
    scf.if %2 {
      %c0_32 = arith.constant 0 : index
      %c0_33 = arith.constant 0 : index
      %c0_34 = arith.constant 0 : index
      %38 = vector.load %arg3[%c0_32, %c0_33, %c0_34] : memref<1x8x32xf32, #tpu.memory_space<vmem>>, vector<1x8x32xf32>
      %39 = vector.shape_cast %38 : vector<1x8x32xf32> to vector<8x32xf32>
      %40 = vector.shape_cast %39 : vector<8x32xf32> to vector<8x4x8xf32>
      %41 = tpu.transpose %40, [1, 0, 2] : vector<8x4x8xf32> -> vector<4x8x8xf32>
      %c0_35 = arith.constant 0 : index
      %c0_36 = arith.constant 0 : index
      %c0_37 = arith.constant 0 : index
      %42 = vector.load %arg7[%c0_35, %c0_36, %c0_37] : memref<4x8x8xf32, #tpu.memory_space<vmem>>, vector<4x8x8xf32>
      tpu.vector_store %arg7[%c0_35, %c0_36, %c0_37], %41 {strides = array<i32>} : memref<4x8x8xf32, #tpu.memory_space<vmem>>, vector<4x8x8xf32>,
      %cst_38 = arith.constant 0xFF800000 : f32
      %43 = vector.broadcast %cst_38 : f32 to vector<4x8x1xf32>
      %c0_39 = arith.constant 0 : index
      %c0_40 = arith.constant 0 : index
      %c0_41 = arith.constant 0 : index
      %44 = vector.load %arg8[%c0_39, %c0_40, %c0_41] : memref<4x8x1xf32, #tpu.memory_space<vmem>>, vector<4x8x1xf32>
      tpu.vector_store %arg8[%c0_39, %c0_40, %c0_41], %43 {strides = array<i32>} : memref<4x8x1xf32, #tpu.memory_space<vmem>>, vector<4x8x1xf32>,
      %cst_42 = arith.constant 0.000000e+00 : f32
      %45 = vector.broadcast %cst_42 : f32 to vector<4x8x1xf32>
      %c0_43 = arith.constant 0 : index
      %c0_44 = arith.constant 0 : index
      %c0_45 = arith.constant 0 : index
      %46 = vector.load %arg9[%c0_43, %c0_44, %c0_45] : memref<4x8x1xf32, #tpu.memory_space<vmem>>, vector<4x8x1xf32>
      tpu.vector_store %arg9[%c0_43, %c0_44, %c0_45], %45 {strides = array<i32>} : memref<4x8x1xf32, #tpu.memory_space<vmem>>, vector<4x8x1xf32>,
      %cst_46 = arith.constant 0.000000e+00 : f32
      %47 = vector.broadcast %cst_46 : f32 to vector<4x8x8xf32>
      %c0_47 = arith.constant 0 : index
      %c0_48 = arith.constant 0 : index
      %c0_49 = arith.constant 0 : index
      %48 = vector.load %arg10[%c0_47, %c0_48, %c0_49] : memref<4x8x8xf32, #tpu.memory_space<vmem>>, vector<4x8x8xf32>
      tpu.vector_store %arg10[%c0_47, %c0_48, %c0_49], %47 {strides = array<i32>} : memref<4x8x8xf32, #tpu.memory_space<vmem>>, vector<4x8x8xf32>,
    } else {
    }
    %c0 = arith.constant 0 : index
    %c0_1 = arith.constant 0 : index
    %c0_2 = arith.constant 0 : index
    %3 = vector.load %arg4[%c0, %c0_1, %c0_2] : memref<1x8x32xf32, #tpu.memory_space<vmem>>, vector<1x8x32xf32>
    %4 = vector.shape_cast %3 : vector<1x8x32xf32> to vector<8x32xf32>
    %5 = vector.shape_cast %4 : vector<8x32xf32> to vector<8x4x8xf32>
    %6 = tpu.transpose %5, [1, 0, 2] : vector<8x4x8xf32> -> vector<4x8x8xf32>
    %c0_3 = arith.constant 0 : index
    %c0_4 = arith.constant 0 : index
    %c0_5 = arith.constant 0 : index
    %7 = vector.load %arg5[%c0_3, %c0_4, %c0_5] : memref<1x8x32xf32, #tpu.memory_space<vmem>>, vector<1x8x32xf32>
    %8 = vector.shape_cast %7 : vector<1x8x32xf32> to vector<8x32xf32>
    %9 = vector.shape_cast %8 : vector<8x32xf32> to vector<8x4x8xf32>
    %10 = tpu.transpose %9, [1, 0, 2] : vector<8x4x8xf32> -> vector<4x8x8xf32>
    %c0_6 = arith.constant 0 : index
    %c0_7 = arith.constant 0 : index
    %c0_8 = arith.constant 0 : index
    %11 = vector.load %arg7[%c0_6, %c0_7, %c0_8] : memref<4x8x8xf32, #tpu.memory_space<vmem>>, vector<4x8x8xf32>
    "tpu.trace_start"() <{level = 10 : i32, message = "hqd,hkd->hqk"}> : () -> ()
    %cst = arith.constant dense<0.000000e+00> : vector<4x8x8xf32>
    %12 = tpu.matmul %11, %6, %cst {dimension_numbers = #tpu.dot_dimension_numbers<[2], [2], [1], [1], [0, 0, 0, 1, 1, 1], [0], [0]>} : vector<4x8x8xf32>, vector<4x8x8xf32>, vector<4x8x8xf32> -> vector<4x8x8xf32>
    "tpu.trace_stop"() : () -> ()
    %c0_9 = arith.constant 0 : index
    %c0_10 = arith.constant 0 : index
    %c0_11 = arith.constant 0 : index
    %13 = vector.load %arg8[%c0_9, %c0_10, %c0_11] : memref<4x8x1xf32, #tpu.memory_space<vmem>>, vector<4x8x1xf32>
    %cst_12 = arith.constant dense<0xFF800000> : vector<4x8xf32>
    %14 = vector.multi_reduction <maximumf>, %12, %cst_12 [2] : vector<4x8x8xf32> to vector<4x8xf32>
    %15 = vector.shape_cast %14 : vector<4x8xf32> to vector<4x8x1xf32>
    %16 = arith.maximumf %13, %15 : vector<4x8x1xf32>
    %17 = arith.subf %13, %16 : vector<4x8x1xf32>
    %18 = math.exp %17 : vector<4x8x1xf32>
    %19 = vector.broadcast %16 : vector<4x8x1xf32> to vector<4x8x8xf32>
    %20 = arith.subf %12, %19 : vector<4x8x8xf32>
    %21 = math.exp %20 : vector<4x8x8xf32>
    %c0_13 = arith.constant 0 : index
    %c0_14 = arith.constant 0 : index
    %c0_15 = arith.constant 0 : index
    %22 = vector.load %arg9[%c0_13, %c0_14, %c0_15] : memref<4x8x1xf32, #tpu.memory_space<vmem>>, vector<4x8x1xf32>
    %23 = arith.mulf %18, %22 : vector<4x8x1xf32>
    %cst_16 = arith.constant dense<0.000000e+00> : vector<4x8xf32>
    %24 = vector.multi_reduction <add>, %21, %cst_16 [2] : vector<4x8x8xf32> to vector<4x8xf32>
    %25 = vector.shape_cast %24 : vector<4x8xf32> to vector<4x8x1xf32>
    %26 = arith.addf %23, %25 : vector<4x8x1xf32>
    %c0_17 = arith.constant 0 : index
    %c0_18 = arith.constant 0 : index
    %c0_19 = arith.constant 0 : index
    %27 = vector.load %arg9[%c0_17, %c0_18, %c0_19] : memref<4x8x1xf32, #tpu.memory_space<vmem>>, vector<4x8x1xf32>
    tpu.vector_store %arg9[%c0_17, %c0_18, %c0_19], %26 {strides = array<i32>} : memref<4x8x1xf32, #tpu.memory_space<vmem>>, vector<4x8x1xf32>,
    %c0_20 = arith.constant 0 : index
    %c0_21 = arith.constant 0 : index
    %c0_22 = arith.constant 0 : index
    %28 = vector.load %arg10[%c0_20, %c0_21, %c0_22] : memref<4x8x8xf32, #tpu.memory_space<vmem>>, vector<4x8x8xf32>
    %29 = vector.broadcast %18 : vector<4x8x1xf32> to vector<4x8x8xf32>
    %30 = arith.mulf %29, %28 : vector<4x8x8xf32>
    "tpu.trace_start"() <{level = 10 : i32, message = "hqk,hkd->hqd"}> : () -> ()
    %cst_23 = arith.constant dense<0.000000e+00> : vector<4x8x8xf32>
    %31 = tpu.matmul %21, %10, %cst_23 {dimension_numbers = #tpu.dot_dimension_numbers<[2], [1], [1], [2], [0, 0, 0, 1, 1, 2], [0], [0]>} : vector<4x8x8xf32>, vector<4x8x8xf32>, vector<4x8x8xf32> -> vector<4x8x8xf32>
    "tpu.trace_stop"() : () -> ()
    %32 = arith.addf %30, %31 : vector<4x8x8xf32>
    %c0_24 = arith.constant 0 : index
    %c0_25 = arith.constant 0 : index
    %c0_26 = arith.constant 0 : index
    %33 = vector.load %arg10[%c0_24, %c0_25, %c0_26] : memref<4x8x8xf32, #tpu.memory_space<vmem>>, vector<4x8x8xf32>
    tpu.vector_store %arg10[%c0_24, %c0_25, %c0_26], %32 {strides = array<i32>} : memref<4x8x8xf32, #tpu.memory_space<vmem>>, vector<4x8x8xf32>,
    %c0_27 = arith.constant 0 : index
    %c0_28 = arith.constant 0 : index
    %c0_29 = arith.constant 0 : index
    %34 = vector.load %arg8[%c0_27, %c0_28, %c0_29] : memref<4x8x1xf32, #tpu.memory_space<vmem>>, vector<4x8x1xf32>
    tpu.vector_store %arg8[%c0_27, %c0_28, %c0_29], %16 {strides = array<i32>} : memref<4x8x1xf32, #tpu.memory_space<vmem>>, vector<4x8x1xf32>,
    %c0_i32_30 = arith.constant 0 : i32
    %35 = arith.cmpi eq, %arg2, %c0_i32_30 : i32
    %36 = arith.extui %35 : i1 to i32
    %c0_i32_31 = arith.constant 0 : i32
    %37 = arith.cmpi ne, %36, %c0_i32_31 : i32
    scf.if %37 {
      %c0_32 = arith.constant 0 : index
      %c0_33 = arith.constant 0 : index
      %c0_34 = arith.constant 0 : index
      %38 = vector.load %arg9[%c0_32, %c0_33, %c0_34] : memref<4x8x1xf32, #tpu.memory_space<vmem>>, vector<4x8x1xf32>
      %39 = tpu.reciprocal %38 : vector<4x8x1xf32> -> vector<4x8x1xf32>
      %c0_35 = arith.constant 0 : index
      %c0_36 = arith.constant 0 : index
      %c0_37 = arith.constant 0 : index
      %40 = vector.load %arg10[%c0_35, %c0_36, %c0_37] : memref<4x8x8xf32, #tpu.memory_space<vmem>>, vector<4x8x8xf32>
      %41 = vector.broadcast %39 : vector<4x8x1xf32> to vector<4x8x8xf32>
      %42 = arith.mulf %40, %41 : vector<4x8x8xf32>
      %43 = tpu.transpose %42, [1, 0, 2] : vector<4x8x8xf32> -> vector<8x4x8xf32>
      %44 = vector.shape_cast %43 : vector<8x4x8xf32> to vector<8x32xf32>
      %c0_38 = arith.constant 0 : index
      %c0_39 = arith.constant 0 : index
      %c0_40 = arith.constant 0 : index
      %45 = vector.load %arg6[%c0_38, %c0_39, %c0_40] : memref<1x8x32xf32, #tpu.memory_space<vmem>>, vector<1x8x32xf32>
      %46 = vector.shape_cast %45 : vector<1x8x32xf32> to vector<8x32xf32>
      %47 = vector.shape_cast %44 : vector<8x32xf32> to vector<1x8x32xf32>
      tpu.vector_store %arg6[%c0_38, %c0_39, %c0_40], %47 {strides = array<i32>} : memref<1x8x32xf32, #tpu.memory_space<vmem>>, vector<1x8x32xf32>,
    } else {
    }
    return
  }
  func.func @transform_0(%arg0: i32, %arg1: i32, %arg2: i32) -> (i32, i32, i32) {
    %c0_i32 = arith.constant 0 : i32
    %c0_i32_0 = arith.constant 0 : i32
    return %arg0, %arg1, %c0_i32 : i32, i32, i32
  }
  func.func @transform_1(%arg0: i32, %arg1: i32, %arg2: i32) -> (i32, i32, i32) {
    %c0_i32 = arith.constant 0 : i32
    %c0_i32_0 = arith.constant 0 : i32
    return %arg0, %arg2, %c0_i32 : i32, i32, i32
  }
  func.func @transform_2(%arg0: i32, %arg1: i32, %arg2: i32) -> (i32, i32, i32) {
    %c0_i32 = arith.constant 0 : i32
    %c0_i32_0 = arith.constant 0 : i32
    return %arg0, %arg2, %c0_i32 : i32, i32, i32
  }
  func.func @transform_3(%arg0: i32, %arg1: i32, %arg2: i32) -> (i32, i32, i32) {
    %c0_i32 = arith.constant 0 : i32
    %c0_i32_0 = arith.constant 0 : i32
    return %arg0, %arg1, %c0_i32 : i32, i32, i32
  }
}

</mosaic_0001>

<bundles_post_ra>
// kernel: rel_multihead_attention_forward.5
= control target key start
LH: loop header
LB: loop body
LE: loop exit
PB: predicated region body
PF: predicated region fallthrough
CT: control target
= control target key end

     0   :  { %8 = vsyncpa [#allocation4], 0  ;;  %s417_s0 = inlined_call_operand.hbm [shape: f32[16,32], index: 0, kind: input, shape index: {}]   ;;  %s418_s1 = inlined_call_operand.hbm [shape: f32[32,32], index: 1, kind: input, shape index: {}]   ;;  %s419_s2 = inlined_call_operand.hbm [shape: f32[1,32], index: 2, kind: input, shape index: {}]   ;;  %s420_s3 = inlined_call_operand.hbm [shape: f32[16,32], index: 3, kind: output, shape index: {}]  }
   0x1   :  { %9 = vsyncpa [#allocation7], 0 }
   0x2   :  { %10 = vsyncpa [#allocation5], 0  ;;  %s318_s12 = smov [#allocation6]   ;;  %s319_s14 = smov [#allocation3]  }
   0x3   :  { %s28_s13 = sshll.u32 %s318_s12, 4  ;;  %s16_s15 = sshll.u32 %s319_s14, 4  ;;  %s29_s13 = int_to_ptr.vmem [resolvable:$true] %s28_s13  ;;  %s345_s15 = int_to_ptr.vmem [resolvable:$true] %s16_s15 }
   0x4   :  { %s224_s18 = scalar_lea.hbm %s418_s1, 512 }
   0x5   :  { %p225_p0 = scmp.ne.s32.totalorder %s418_s1, %s224_s18  ;;  %p228_p1 = scmp.lt.u32.totalorder %s224_s18, %s418_s1 }
   0x7   :  { %p230_p2 = pnand %p228_p1, %p225_p0 }
   0x9   :  { %233 = shalt.err (!%p230_p2)
}
   0xa   :  { %s234_s23 = scalar_lea.vmem %s29_s13, 512  ;;  %p239_p4 = scmp.lt.s32.totalorder %s29_s13, %s29_s13 }
   0xb   :  { %p235_p3 = scmp.ne.s32.totalorder %s29_s13, %s234_s23  ;;  %p240_p5 = scmp.lt.s32.totalorder %s234_s23, %s234_s23 }
   0xd   :  { %p241_p6 = por %p240_p5, %p239_p4 }
   0xf   :  { %p242_p7 = pnand %p241_p6, %p235_p3 }
  0x11   :  { %245 = shalt.err (!%p242_p7)
}
  0x12   :  { %s320_s24 = smov 128   ;;  %s321_s25 = smov 8  }
  0x13   :  { %34 = dma.hbm_to_vmem [thread:$0]  %s418_s1, 512, %s29_s13, [#allocation7], %s320_s24, %s320_s24, %s321_s25  }
  0x14   :  { %s246_s30 = scalar_lea.hbm %s417_s0, 256 }
  0x15   :  { %p247_p8 = scmp.ne.s32.totalorder %s417_s0, %s246_s30  ;;  %p250_p9 = scmp.lt.u32.totalorder %s246_s30, %s417_s0 }
  0x17   :  { %p252_p10 = pnand %p250_p9, %p247_p8 }
  0x19   :  { %255 = shalt.err (!%p252_p10)
}
  0x1a   :  { %s256_s8 = scalar_lea.vmem %s345_s15, 256  ;;  %p261_p12 = scmp.lt.s32.totalorder %s345_s15, %s345_s15 }
  0x1b   :  { %p257_p11 = scmp.ne.s32.totalorder %s345_s15, %s256_s8  ;;  %p262_p13 = scmp.lt.s32.totalorder %s256_s8, %s256_s8 }
  0x1d   :  { %p263_p0 = por %p262_p13, %p261_p12 }
  0x1f   :  { %p264_p1 = pnand %p263_p0, %p257_p11 }
  0x21   :  { %267 = shalt.err (!%p264_p1)
}
  0x22   :  { %22 = dma.hbm_to_vmem [thread:$0]  %s417_s0, 256, %s345_s15, [#allocation4], %s320_s24, %s320_s24, %s321_s25  }
  0x23   :  { %s322_s10 = smov [#allocation8]   ;;  %s268_s14 = scalar_lea.hbm %s419_s2, 16 }
  0x24   :  { %s41_s11 = sshll.u32 %s322_s10, 4  ;;  %p269_p2 = scmp.ne.s32.totalorder %s419_s2, %s268_s14  ;;  %s42_s11 = int_to_ptr.vmem [resolvable:$true] %s41_s11 }
  0x25   :  { %p272_p3 = scmp.lt.u32.totalorder %s268_s14, %s419_s2 }
  0x27   :  { %p274_p4 = pnand %p272_p3, %p269_p2 }
  0x29   :  { %277 = shalt.err (!%p274_p4)
}
  0x2a   :  { %s278_s20 = scalar_lea.vmem %s42_s11, 16  ;;  %s282_s0 = scalar_lea.vmem %s42_s11, 32 }
  0x2b   :  { %p279_p5 = scmp.ne.s32.totalorder %s42_s11, %s278_s20  ;;  %p283_p6 = scmp.lt.s32.totalorder %s42_s11, %s42_s11 }
  0x2c   :  { %p284_p7 = scmp.lt.s32.totalorder %s282_s0, %s278_s20 }
  0x2e   :  { %p285_p8 = por %p284_p7, %p283_p6 }
  0x30   :  { %p286_p9 = pnand %p285_p8, %p279_p5 }
  0x32   :  { %289 = shalt.err (!%p286_p9)
}
  0x33   :  { %44 = dma.hbm_to_vmem [thread:$0]  %s419_s2, 16, %s42_s11, [#allocation7]  }
  0x34   :  { %312 = dma.done.wait [#allocation4], 256  }
  0x35   :  { %313 = vsyncadd [#allocation4], 4294967040 }
  0x36   :  { %314 = dma.done.wait [#allocation7], 528  }
  0x37   :  { %315 = vsyncadd [#allocation7], 4294966768  ;;  %vm58_vm0 = vcmask 261120   ;;  %v323_v0 = vmov 0.0   ;;  %v65_v1 = vld [vmem:[#allocation6] sm:$0xff]  ;;  %v66_v2 = vld [vmem:[#allocation6 + $0x8] sm:$0xff] }
  0x38   :  { %60 = vst.msk [vmem:[#allocation2 + $0x8] sm:$0xff] %vm58_vm0, %v323_v0  ;;  %59 = vst.msk [vmem:[#allocation2] sm:$0xff] %vm58_vm0, %v323_v0  ;;  %v67_v3 = vld [vmem:[#allocation6 + $0x10] sm:$0xff]  ;;  %v209_v4 = vpack.c.bf16 %v66_v2, %v65_v1  ;;  %v68_v5 = vld [vmem:[#allocation6 + $0x18] sm:$0xff]  ;;  %s324_s2 = smov [#allocation9]  }
  0x39   :  { %v63_v6 = vld [vmem:[#allocation3] sm:$0xff]  ;;  %v213_v7 = vpack.c.bf16 %v68_v5, %v67_v3  ;;  %v64_v8 = vld [vmem:[#allocation3 + $0x8] sm:$0xff]  ;;  %v191_v15 = vld [vmem:[#allocation8] ss:$0 sm:$0xff]  ;;  %s176_s22 = sshll.u32 %s324_s2, 4  ;;  %s177_s22 = int_to_ptr.vmem [resolvable:$true] %s176_s22 }
  0x3a   :  { %206 = vmatprep.mubr.msk.f32.mxu0 %vm58_vm0, %v63_v6  ;;  %210 = vmatprep.subr.bf16.mxu0 %v209_v4  ;;  %s290_s23 = scalar_lea.vmem %s177_s22, 256  ;;  %p295_p11 = scmp.lt.s32.totalorder %s177_s22, %s177_s22 }
  0x3b   :  { %212 = vmatpush3.bf16.msra.mxu0 %v209_v4  ;;  %p291_p10 = scmp.ne.s32.totalorder %s177_s22, %s290_s23  ;;  %p296_p12 = scmp.lt.s32.totalorder %s290_s23, %s290_s23 }
  0x3c   :  { %214 = vmatprep.subr.bf16.mxu0 %v213_v7 }
  0x3d   :  { %p297_p13 = por %p296_p12, %p295_p11 }
  0x3f   :  { %216 = vmatpush3.bf16.msra.mxu0 %v213_v7  ;;  %v62_v9 = vld [vmem:[#allocation2 + $0x8] sm:$0xff]  ;;  %v61_v10 = vld [vmem:[#allocation2] sm:$0xff]  ;;  %p298_p0 = pnand %p297_p13, %p291_p10 }
  0x42   :  { %207 = vmatmul.mubr.msk.f32.vlgmr.msra.gmra.mrb[0].mxu0 %vm58_vm0, %v64_v8 }
 0x115   :  { %v208_v11 = vpop.f32.mrb[0].mxu0 }
 0x116   :  { %v152_v12 = vadd.f32 %v208_v11, %v62_v9  ;;  %v142_v13 = vpop.f32.mrb[1].mxu0 }
 0x117   :  { %v151_v14 = vadd.f32 %v142_v13, %v61_v10 }
 0x118   :  { %154 = vst.msk [vmem:[#allocation2 + $0x8] sm:$0xff] %vm58_vm0, %v152_v12 }
 0x119   :  { %153 = vst.msk [vmem:[#allocation2] sm:$0xff] %vm58_vm0, %v151_v14 }
 0x11f   :  { %v159_v16 = vld [vmem:[#allocation2 + $0x8] sm:$0xff] }
 0x120   :  { %v158_v17 = vld [vmem:[#allocation2] sm:$0xff]  ;;  %v168_v18 = vadd.f32 %v191_v15, %v159_v16 }
 0x121   :  { %v167_v19 = vadd.f32 %v191_v15, %v158_v17 }
 0x122   :  { %170 = vst.msk [vmem:[#allocation9 + $0x8] sm:$0xff] %vm58_vm0, %v168_v18 }
 0x123   :  { %169 = vst.msk [vmem:[#allocation9] sm:$0xff] %vm58_vm0, %v167_v19 }
 0x124   :  { %301 = shalt.err (!%p298_p0)
}
 0x125   :  { %s302_s28 = scalar_lea.hbm %s420_s3, 256 }
 0x126   :  { %p303_p1 = scmp.ne.s32.totalorder %s420_s3, %s302_s28  ;;  %p306_p2 = scmp.lt.u32.totalorder %s302_s28, %s420_s3 }
 0x128   :  { %p308_p3 = pnand %p306_p2, %p303_p1 }
 0x12a   :  { %311 = shalt.err (!%p308_p3)
}
 0x12b   :  { %182 = dma.vmem_to_hbm [thread:$0]  %s177_s22, 256, %s420_s3, [#allocation5], %s320_s24, %s320_s24, %s321_s25  }
 0x12c   :  { %316 = dma.done.wait [#allocation5], 256  }
 0x12d   :  { %317 = vsyncadd [#allocation5], 4294967040 }
 0x12e   :  { %186 = vsyncpa [#allocation4], 1 }
 0x12f   :  { %187 = vsyncpa [#allocation7], 1 }
 0x130   :  { %188 = vsyncpa [#allocation5], 1 }

// kernel: rel_multihead_attention_forward.8
= control target key start
LH: loop header
LB: loop body
LE: loop exit
PB: predicated region body
PF: predicated region fallthrough
CT: control target
= control target key end

     0   :  { %s2718_s0 = inlined_call_operand.hbm [shape: f32[2,8,32], index: 0, kind: input, shape index: {}]   ;;  %s2719_s1 = inlined_call_operand.hbm [shape: f32[2,8,32], index: 1, kind: input, shape index: {}]   ;;  %s2720_s2 = inlined_call_operand.hbm [shape: f32[2,8,32], index: 2, kind: input, shape index: {}]   ;;  %s2721_s3 = inlined_call_operand.hbm [shape: f32[2,8,32], index: 3, kind: output, shape index: {}]  }
   0x1   :  { %2727 = sst [smem:[#allocation19_spill]] %s2719_s1 }
   0x2   :  { %8 = vsyncpa [#allocation7], 0 }
   0x3   :  { %10 = vsyncpa [#allocation7 + $0x1], 0 }
   0x4   :  { %11 = vsyncpa [#allocation10], 0 }
   0x5   :  { %13 = vsyncpa [#allocation10 + $0x1], 0 }
   0x6   :  { %14 = vsyncpa [#allocation8], 0 }
   0x7   :  { %16 = vsyncpa [#allocation8 + $0x1], 0  ;;  %s2240_s12 = smov 0   ;;  %s2242_s13 = smov 0  }
   0x8   :  { %s2244_s14 = smov 0   ;;  %s2246_s15 = smov 0  }
   0x9   :  { %s2248_s16 = smov 0   ;;  %s2250_s17 = smov 0  }
   0xa LB: > { %2728 = sst [smem:[#allocation16_spill]] %s2198_s16  ;;  %s2271_s18 = sadd.s32 4294967295, %s2202_s17   ;;  %s2202_s17 = sphi %s2250_s17, %s22_s17   ;;  %s2198_s16 = sphi %s2248_s16, %s2749_s16   ;;  %s2194_s15 = sphi %s2246_s15, %s2748_s15   ;;  %s2190_s14 = sphi %s2244_s14, %s2752_s14   ;;  %s2186_s13 = sphi %s2242_s13, %s2751_s13   ;;  %s2182_s12 = sphi %s2240_s12, %s2750_s12  }
   0xb   : > { %s1822_s19 = sadd.s32 4294967294, %s2202_s17   ;;  %s41_s20 = sadd.s32 1, %s2198_s16 }
   0xc   : > { %s50_s21 = sadd.s32 1, %s2190_s14  ;;  %p43_p0 = scmp.ge.s32.totalorder %s41_s20, 2 }
   0xd   : > { %p57_p1 = scmp.ne.s32.totalorder %s2190_s14, %s2186_s13  ;;  %p58_p2 = scmp.eq.s32.totalorder %s2202_s17, 0 }
   0xe   : > { %p63_p3 = scmp.ne.s32.totalorder %s2186_s13, %s2182_s12  ;;  %s2754_s20 = smov (%p43_p0, %s41_s20), 0 }
   0xf   : > { %2729 = sst [smem:[#allocation17_spill]] %s2754_s20  ;;  %p2283_p4 = por %p58_p2, %p57_p1 }
  0x10   : > { %p64_p5 = scmp.eq.s32.totalorder %s2271_s18, 0  ;;  %s45_s23 = ssub.s32 %s2198_s16, %s2754_s20 }
  0x11   : > { %p145_p6 = scmp.eq.s32.totalorder %s2271_s18, 1  ;;  %p48_p7 = scmp.eq.s32.totalorder %s45_s23, 0 }
  0x12   : > { %p2291_p8 = por %p64_p5, %p63_p3  ;;  %p151_p10 = scmp.eq.s32.totalorder %s1822_s19, 1 }
  0x13   : > { %p2295_p9 = por %p145_p6, %p57_p1  ;;  %p1938_p13 = scmp.lt.s32.totalorder %s2202_s17, 2 }
  0x14   : > { %s2731_s24 = scalar_select %p2291_p8, 1, 0 }
  0x15   : > { %s2732_s25 = scalar_select %p2295_p9, 1, 0 }
  0x16   : > { %s2300_s26 = scalar_select %p48_p7, %s2190_s14, %s50_s21  }
  0x17   : > { %p2302_p11 = por %p151_p10, %p63_p3  ;;  %s171_s28 = sand.u32 1, %s2190_s14  }
  0x18   : > { %2733 = sst [smem:[#allocation18_spill]] %s2300_s26  ;;  %s2311_s29 = sshll.u32 %s171_s28, 3 }
  0x19   : > { %s2734_s27 = scalar_select %p2302_p11, 1, 0 }
  0x1a   : > { %s2314_s30 = sshll.u32 %s2198_s16, 7  ;;  %p2318_p0 = pnand %p1938_p13, %p2283_p4 }
  0x1b   : > { %s190_s5 = sand.u32 1, %s2202_s17   ;;  %s2736_s1 = sld [smem:[#allocation19_spill]] }
  0x1c   : > { %s2735_s4 = scalar_select %p2318_p0, 1, 0 }
  0x1d   : > { %s194_s9 = scalar_lea.vmem [#allocation9], %s2311_s29  ;;  %s2334_s11 = scalar_lea.sflag [#allocation10], %s190_s5 }
  0x1e   : > { %s202_s10 = sshll.u32 %s194_s9, 4  ;;  %p2340_p4 = pneg %p2318_p0  ;;  %s2331_s10 = int_to_ptr.vmem [resolvable:$true] %s202_s10 }
  0x21   : > { %s2327_s8 = scalar_lea.hbm %s2736_s1, %s2314_s30  ;;  %s2031_s6 = scalar_lea.hbm %s2736_s1, 256 }
  0x22   : > { %s2026_s19 = scalar_lea.hbm %s2327_s8, 128  ;;  %p2032_p7 = scmp.lt.u32.totalorder %s2327_s8, %s2736_s1 }
  0x23   : > { %p2027_p3 = scmp.ne.s32.totalorder %s2327_s8, %s2026_s19  ;;  %p2033_p10 = scmp.lt.u32.totalorder %s2031_s6, %s2026_s19 }
  0x24   : > { %p2035_p12 = scmp.lt.u32.totalorder %s2026_s19, %s2327_s8 }
  0x25   : > { %p2029_p5 = pnand %p2340_p4, %p2027_p3  ;;  %p2034_p13 = por %p2033_p10, %p2032_p7 }
  0x27   : > { %p2030_p6 = pneg %p2029_p5  ;;  %p2036_p1 = por %p2035_p12, %p2034_p13 }
  0x29   : > { %p2037_p2 = pnand %p2036_p1, %p2030_p6 }
  0x2b   : > { %2040 = shalt.err (!%p2037_p2)
}
  0x2c   : > { %s2041_s5 = scalar_lea.vmem %s2331_s10, 128  ;;  %s2204_s22 = smov [#allocation9]  }
  0x2d   : > { %p2042_p3 = scmp.ne.s32.totalorder %s2331_s10, %s2041_s5  ;;  %s2046_s23 = sshll.u32 %s2204_s22, 4  ;;  %s2047_s23 = int_to_ptr.vmem [resolvable:$false] %s2046_s23 }
  0x2e   : > { %s2048_s7 = scalar_lea.vmem %s2047_s23, 256  ;;  %p2049_p9 = scmp.lt.s32.totalorder %s2331_s10, %s2047_s23 }
  0x2f   : > { %p2044_p5 = pnand %p2042_p3, %p2340_p4  ;;  %p2050_p8 = scmp.lt.s32.totalorder %s2048_s7, %s2041_s5 }
  0x31   : > { %p2045_p11 = pneg %p2044_p5  ;;  %p2051_p7 = por %p2050_p8, %p2049_p9 }
  0x33   : > { %p2052_p10 = pnand %p2051_p7, %p2045_p11 }
  0x35   : > { %2055 = shalt.err (!%p2052_p10)
}
  0x36   : > { %1930 = dma.hbm_to_vmem [thread:$0]  (!%p2318_p0), %s2327_s8, 128, %s2331_s10, %s2334_s11  }
  0x37   : > { %p2738_p12 = scmp.lt.s32.totalorder %s2202_s17, 3  ;;  %p2739_p1 = scmp.ge.s32.totalorder %s2202_s17, 1 }
  0x38   : > { %s2376_s5 = scalar_lea.hbm %s2718_s0, %s2314_s30  ;;  %s175_s22 = scalar_lea.vmem [#allocation6], %s2311_s29 }
  0x39   : > { %p2368_p2 = pnand %p2739_p1, %p2738_p12  ;;  %s183_s23 = sshll.u32 %s175_s22, 4  ;;  %s2379_s23 = int_to_ptr.vmem [resolvable:$true] %s183_s23 }
  0x3a   : > { %s2385_s7 = scalar_lea.hbm %s2720_s2, %s2314_s30  ;;  %s172_s1 = scalar_lea.sflag [#allocation7], %s171_s28 }
  0x3b   : > { %s2740_s19 = scalar_select %p2368_p2, 1, 0 }
  0x3c   : > { %s2056_s20 = scalar_lea.hbm %s2376_s5, 128  ;;  %s2061_s16 = scalar_lea.hbm %s2718_s0, 256 }
  0x3d   : > { %p2057_p8 = scmp.ne.s32.totalorder %s2376_s5, %s2056_s20  ;;  %p2062_p6 = scmp.lt.u32.totalorder %s2376_s5, %s2718_s0 }
  0x3e   : > { %p2063_p13 = scmp.lt.u32.totalorder %s2061_s16, %s2056_s20  ;;  %p2065_p5 = scmp.lt.u32.totalorder %s2056_s20, %s2376_s5 }
  0x3f   : > { %p2059_p9 = pnand %p2057_p8, %p2340_p4 }
  0x40   : > { %p2064_p3 = por %p2063_p13, %p2062_p6 }
  0x41   : > { %p2060_p11 = pneg %p2059_p9 }
  0x42   : > { %p2066_p7 = por %p2065_p5, %p2064_p3 }
  0x44   : > { %p2067_p10 = pnand %p2066_p7, %p2060_p11 }
  0x46   : > { %2070 = shalt.err (!%p2067_p10)
}
  0x47   : > { %s2071_s28 = scalar_lea.vmem %s2379_s23, 128  ;;  %s2205_s30 = smov [#allocation6]  }
  0x48   : > { %p2072_p12 = scmp.ne.s32.totalorder %s2379_s23, %s2071_s28  ;;  %s2076_s8 = sshll.u32 %s2205_s30, 4  ;;  %s2077_s8 = int_to_ptr.vmem [resolvable:$false] %s2076_s8 }
  0x49   : > { %s2078_s26 = scalar_lea.vmem %s2077_s8, 256  ;;  %p2079_p9 = scmp.lt.s32.totalorder %s2379_s23, %s2077_s8 }
  0x4a   : > { %p2074_p1 = pnand %p2072_p12, %p2340_p4  ;;  %p2080_p2 = scmp.lt.s32.totalorder %s2078_s26, %s2071_s28 }
  0x4c   : > { %p2075_p8 = pneg %p2074_p1  ;;  %p2081_p6 = por %p2080_p2, %p2079_p9 }
  0x4e   : > { %p2082_p13 = pnand %p2081_p6, %p2075_p8 }
  0x50   : > { %2085 = shalt.err (!%p2082_p13)
}
  0x51   : > { %1927 = dma.hbm_to_vmem [thread:$0]  (!%p2318_p0), %s2376_s5, 128, %s2379_s23, %s172_s1  }
  0x52   : > { %s213_s16 = scalar_lea.vmem [#allocation11], %s2311_s29  ;;  %s2086_s10 = scalar_lea.hbm %s2385_s7, 128 }
  0x53   : > { %s221_s20 = sshll.u32 %s213_s16, 4  ;;  %p2087_p11 = scmp.ne.s32.totalorder %s2385_s7, %s2086_s10  ;;  %s222_s20 = int_to_ptr.vmem [resolvable:$true] %s221_s20 }
  0x54   : > { %s2091_s22 = scalar_lea.hbm %s2720_s2, 256  ;;  %p2092_p5 = scmp.lt.u32.totalorder %s2385_s7, %s2720_s2 }
  0x55   : > { %p2089_p2 = pnand %p2087_p11, %p2340_p4  ;;  %p2093_p7 = scmp.lt.u32.totalorder %s2091_s22, %s2086_s10 }
  0x56   : > { %p2095_p12 = scmp.lt.u32.totalorder %s2086_s10, %s2385_s7 }
  0x57   : > { %p2090_p3 = pneg %p2089_p2  ;;  %p2094_p10 = por %p2093_p7, %p2092_p5 }
  0x59   : > { %p2096_p1 = por %p2095_p12, %p2094_p10 }
  0x5b   : > { %p2097_p8 = pnand %p2096_p1, %p2090_p3 }
  0x5d   : > { %2100 = shalt.err (!%p2097_p8)
}
  0x5e   : > { %s2101_s1 = scalar_lea.vmem %s222_s20, 128  ;;  %s2206_s29 = smov [#allocation11]  }
  0x5f   : > { %p2102_p9 = scmp.ne.s32.totalorder %s222_s20, %s2101_s1  ;;  %s2106_s5 = sshll.u32 %s2206_s29, 4  ;;  %s2107_s5 = int_to_ptr.vmem [resolvable:$false] %s2106_s5 }
  0x60   : > { %s2108_s23 = scalar_lea.vmem %s2107_s5, 256  ;;  %p2109_p11 = scmp.lt.s32.totalorder %s222_s20, %s2107_s5 }
  0x61   : > { %p2104_p6 = pnand %p2102_p9, %p2340_p4  ;;  %p2110_p2 = scmp.lt.s32.totalorder %s2108_s23, %s2101_s1 }
  0x63   : > { %p2105_p13 = pneg %p2104_p6  ;;  %p2111_p0 = por %p2110_p2, %p2109_p11 }
  0x65   : > { %p2112_p5 = pnand %p2111_p0, %p2105_p13 }
  0x67   : > { %2115 = shalt.err (!%p2112_p5)
}
  0x68   : > { %p2741_p7 = scmp.ne.s32.totalorder %s2735_s4, 0  ;;  %p2742_p3 = scmp.ne.s32.totalorder %s2740_s19, 0 }
  0x69   : > { %s2432_s21 = sand.u32 (!%p2742_p3), 1, %s2186_s13   ;;  %p2743_p0 = scmp.ne.s32.totalorder (!%p2742_p3), %s2731_s24, 0 }
  0x6a   : > { %1933 = dma.hbm_to_vmem [thread:$0]  (!%p2741_p7), %s2385_s7, 128, %s222_s20, %s2334_s11  }
  0x6b   : > { %230 = sbr.rel (%p2742_p3) target bundleno = 1231 (0x4cf), region = 32  ;;  %s2435_s8 = sshll.u32 (!%p2742_p3), %s2432_s21, 3 }
  0x6c   : > { %s233_s26 = scalar_lea.sflag (!%p2742_p3), [#allocation7], %s2432_s21  ;;  %s236_s16 = scalar_lea.vmem (!%p2742_p3), [#allocation6], %s2435_s8 }
  0x72   : > { %2169 = dma.done.wait (%p2743_p0), %s233_s26, 128  }
  0x73   : > { %2171 = vsyncadd (%p2743_p0), %s233_s26, 4294967168  ;;  %s241_s4 = sand.u32 1, %s2271_s18   ;;  %s245_s19 = scalar_lea.vmem [#allocation9], %s2435_s8 }
  0x74   : > { %s242_s11 = scalar_lea.sflag [#allocation10], %s241_s4 }
  0x75   : > { %2173 = dma.done.wait (%p2743_p0), %s242_s11, 256  }
  0x76   : > { %2175 = vsyncadd (%p2743_p0), %s242_s11, 4294967040  ;;  %v291_v0 = vld [vmem:[%s236_s16] sm:$0xff]  ;;  %s2207_s7 = smov 104   ;;  %s2208_s20 = smov 120   ;;  %v456_v1 = vld [vmem:[%s245_s19] sm:$0xff]  ;;  %vm438_vm0 = vcmask 64512   ;;  %v307_v5 = vlaneseq }
  0x77   : > { %299 = vrot.lane.b32.xlu1 %v291_v0, %s2207_s7  ;;  %293 = vrot.lane.b32.xlu0 %v291_v0, %s2208_s20  ;;  %s2209_s10 = smov 112   ;;  %v2210_v2 = vmov 0.0   ;;  %vm2211_vm1 = vmmov 0   ;;  %v2212_v3 = vmov 1983009808   ;;  %vm443_vm2 = vcmask 7168  }
  0x78   : > { %1876 = vmatprep.subr.mxu0 %v2210_v2  ;;  %452 = vst.msk [vmem:[#allocation5] sm:$0xff] %vm438_vm0, %v2210_v2  ;;  %453 = vst.msk [vmem:[#allocation5 + $0x8] sm:$0xff] %vm438_vm0, %v2210_v2  ;;  %1881 = vmatprep.subr.mxu1 %v2210_v2  ;;  %v305_v4 = vunpack.c.l.s4 %v2212_v3  ;;  %v2213_v6 = vmov 1934713408   ;;  %v308_v9 = vshrl.u32 %v307_v5, 7  ;;  %s254_s18 = scalar_lea.vmem [#allocation11], %s2435_s8 }
  0x79   : > { %454 = vst.msk [vmem:[#allocation5 + $0x10] sm:$0xff] %vm438_vm0, %v2210_v2  ;;  %455 = vst.msk [vmem:[#allocation5 + $0x18] sm:$0xff] %vm438_vm0, %v2210_v2  ;;  %1878 = vmatprep.mubr.msk.f32.mxu0 %vm2211_vm1, %v2210_v2  ;;  %1883 = vmatprep.mubr.msk.f32.mxu1 %vm2211_vm1, %v2210_v2  ;;  %v337_v7 = vunpack.c.l.s4 %v2213_v6  ;;  %s2216_s24 = smov 16   ;;  %s2217_s6 = smov 8   ;;  %vm1672_vm3 = vcmask 130048   ;;  %vm1674_vm4 = vcmask 195584  }
  0x7a   : > { %v306_v8 = vunpack.c.0.s8 %v305_v4  ;;  %448 = vst.msk [vmem:[#allocation4] sm:$0xff] %vm443_vm2, %v2210_v2  ;;  %449 = vst.msk [vmem:[#allocation4 + $0x8] sm:$0xff] %vm443_vm2, %v2210_v2  ;;  %s2218_s9 = smov 24   ;;  %s1857_s22 = sshll.u32 %s2194_s15, 7  ;;  %vm1676_vm5 = vcmask 261120  }
  0x7b   : > { %458 = vrot.lane.b32.xlu1 %v456_v1, %s2208_s20  ;;  %296 = vrot.lane.b32.xlu0 %v291_v0, %s2209_s10  ;;  %v338_v12 = vunpack.c.0.s8 %v337_v7  ;;  %450 = vst.msk [vmem:[#allocation4 + $0x10] sm:$0xff] %vm443_vm2, %v2210_v2  ;;  %451 = vst.msk [vmem:[#allocation4 + $0x18] sm:$0xff] %vm443_vm2, %v2210_v2  ;;  %s286_s28 = scalar_lea.vmem [#allocation12], %s2435_s8  ;;  %s2669_s5 = scalar_lea.hbm %s2721_s3, %s1857_s22 }
  0x7c   : > { %v2469_v13 = vsub.s32 %v306_v8, %v308_v9  ;;  %s1693_s30 = sshll.u32 %s286_s28, 4  ;;  %s1679_s23 = scalar_lea.sflag [#allocation8], %s2432_s21  ;;  %s2671_s30 = int_to_ptr.vmem [resolvable:$true] %s1693_s30 }
  0x7d   : > { %v2471_v20 = vsub.s32 %v338_v12, %v308_v9  ;;  %s2116_s15 = scalar_lea.vmem %s2671_s30, 128  ;;  %p2744_p10 = scmp.ne.s32.totalorder %s2732_s25, 0 }
  0x7e   : > { %p2117_p4 = scmp.ne.s32.totalorder %s2671_s30, %s2116_s15  ;;  %s2219_s8 = smov [#allocation12]  }
  0x7f   : > { %464 = vrot.lane.b32.xlu1 %v456_v1, %s2207_s7  ;;  %461 = vrot.lane.b32.xlu0 %v456_v1, %s2209_s10  ;;  %s2120_s26 = sshll.u32 %s2219_s8, 4  ;;  %s2121_s26 = int_to_ptr.vmem [resolvable:$false] %s2120_s26 }
  0x80   : > { %p2118_p12 = pnand %p2117_p4, %p2744_p10  ;;  %s2122_s16 = scalar_lea.vmem %s2121_s26, 256 }
  0x81   : > { %p2123_p8 = scmp.lt.s32.totalorder %s2671_s30, %s2121_s26  ;;  %p2124_p9 = scmp.lt.s32.totalorder %s2122_s16, %s2116_s15 }
  0x82   : > { %p2119_p1 = pneg %p2118_p12 }
  0x83   : > { %p2125_p6 = por %p2124_p9, %p2123_p8 }
  0x85   : > { %p2126_p13 = pnand %p2125_p6, %p2119_p1 }
  0xe9   : > { %v300_v10 = vpop.permute.xlu1 %299  ;;  %v294_v11 = vpop.permute.xlu0 %293 }
  0xea   : > { %v318_v14 = vcombine.low %v294_v11, %v300_v10  ;;  %v319_v15 = vcombine.high %v294_v11, %v300_v10 }
  0xec   : > { %v326_v21 = vrot.slane %v318_v14, %v2469_v13  ;;  %v333_v22 = vrot.slane %v319_v15, %v2469_v13 }
  0xed   : > { %v459_v16 = vpop.permute.xlu1 %458  ;;  %v297_v17 = vpop.permute.xlu0 %296 }
  0xee   : > { %v302_v18 = vcombine.low %v291_v0, %v297_v17  ;;  %v303_v19 = vcombine.high %v291_v0, %v297_v17 }
  0xf0   : > { %v310_v23 = vrot.slane %v302_v18, %v2469_v13  ;;  %v317_v24 = vrot.slane %v303_v19, %v2469_v13 }
  0xf1   : > { %v465_v25 = vpop.permute.xlu1 %464  ;;  %v462_v26 = vpop.permute.xlu0 %461 }
  0xf2   : > { %v334_v27 = vcombine.low %v310_v23, %v326_v21  ;;  %v335_v28 = vcombine.high %v310_v23, %v326_v21  ;;  %v350_v29 = vcombine.low %v317_v24, %v333_v22  ;;  %v351_v30 = vcombine.high %v317_v24, %v333_v22 }
  0xf3   : > { %v483_v31 = vcombine.low %v459_v16, %v465_v25  ;;  %v484_v32 = vcombine.high %v459_v16, %v465_v25  ;;  %v467_v33 = vcombine.low %v456_v1, %v462_v26  ;;  %v468_v34 = vcombine.high %v456_v1, %v462_v26 }
  0xf4   : > { %v342_v35 = vrot.slane %v334_v27, %v2471_v20  ;;  %v349_v36 = vrot.slane %v335_v28, %v2471_v20  ;;  %v358_v37 = vrot.slane %v350_v29, %v2471_v20  ;;  %v365_v38 = vrot.slane %v351_v30, %v2471_v20 }
  0xf5   : > { %v491_v39 = vrot.slane %v483_v31, %v2469_v13  ;;  %v498_v40 = vrot.slane %v484_v32, %v2469_v13  ;;  %v475_v41 = vrot.slane %v467_v33, %v2469_v13  ;;  %v482_v42 = vrot.slane %v468_v34, %v2469_v13 }
  0xf6   : > { %v370_v43 = vcombine.low %v342_v35, %v349_v36  ;;  %v1836_v44 = vcombine.high %v342_v35, %v349_v36  ;;  %v386_v45 = vcombine.low %v358_v37, %v365_v38  ;;  %v1837_v46 = vcombine.high %v358_v37, %v365_v38 }
  0xf7   : > { %v499_v47 = vcombine.low %v475_v41, %v491_v39  ;;  %v500_v48 = vcombine.high %v475_v41, %v491_v39  ;;  %v515_v49 = vcombine.low %v482_v42, %v498_v40  ;;  %v516_v50 = vcombine.high %v482_v42, %v498_v40 }
  0xf8   : > { %v377_v51 = vrot.slane %v370_v43, %v2469_v13  ;;  %v385_v52 = vrot.slane %v1836_v44, %v2469_v13  ;;  %v393_v53 = vrot.slane %v386_v45, %v2469_v13  ;;  %v401_v54 = vrot.slane %v1837_v46, %v2469_v13 }
  0xf9   : > { %v507_v55 = vrot.slane %v499_v47, %v2471_v20  ;;  %v514_v56 = vrot.slane %v500_v48, %v2471_v20  ;;  %v523_v57 = vrot.slane %v515_v49, %v2471_v20  ;;  %v530_v58 = vrot.slane %v516_v50, %v2471_v20 }
  0xfa   : > { %v402_v59 = vcombine.low %v377_v51, %v385_v52  ;;  %v403_v60 = vcombine.high %v377_v51, %v385_v52  ;;  %v418_v61 = vcombine.low %v393_v53, %v401_v54  ;;  %v419_v62 = vcombine.high %v393_v53, %v401_v54 }
  0xfb   : > { %v535_v63 = vcombine.low %v507_v55, %v514_v56  ;;  %v1838_v0 = vcombine.high %v507_v55, %v514_v56  ;;  %v551_v1 = vcombine.low %v523_v57, %v530_v58  ;;  %v1839_v3 = vcombine.high %v523_v57, %v530_v58  ;;  %v603_v58 = vld [vmem:[%s254_s18] sm:$0xff] }
  0xfc   : > { %v410_v4 = vrot.slane %v402_v59, %v2471_v20  ;;  %v417_v5 = vrot.slane %v403_v60, %v2471_v20  ;;  %v426_v6 = vrot.slane %v418_v61, %v2471_v20  ;;  %v433_v7 = vrot.slane %v419_v62, %v2471_v20 }
  0xfd   : > { %v542_v8 = vrot.slane %v535_v63, %v2469_v13  ;;  %v550_v9 = vrot.slane %v1838_v0, %v2469_v13  ;;  %v558_v10 = vrot.slane %v551_v1, %v2469_v13  ;;  %v566_v11 = vrot.slane %v1839_v3, %v2469_v13 }
  0xfe   : > { %v434_v12 = vcombine.low %v410_v4, %v426_v6  ;;  %v435_v14 = vcombine.high %v410_v4, %v426_v6  ;;  %v436_v15 = vcombine.low %v417_v5, %v433_v7  ;;  %v437_v16 = vcombine.high %v417_v5, %v433_v7 }
  0xff   : > { %v567_v17 = vcombine.low %v542_v8, %v550_v9  ;;  %v568_v18 = vcombine.high %v542_v8, %v550_v9  ;;  %v583_v19 = vcombine.low %v558_v10, %v566_v11  ;;  %v584_v21 = vcombine.high %v558_v10, %v566_v11 }
 0x100   : > { %439 = vst.msk [vmem:[#allocation2] sm:$0xff] %vm438_vm0, %v434_v12  ;;  %440 = vst.msk [vmem:[#allocation2 + $0x8] sm:$0xff] %vm438_vm0, %v435_v14  ;;  %v2214_v34 = vmov -inf   ;;  %v2215_v47 = vmov 0  }
 0x101   : > { %441 = vst.msk [vmem:[#allocation2 + $0x10] sm:$0xff] %vm438_vm0, %v436_v15  ;;  %442 = vst.msk [vmem:[#allocation2 + $0x18] sm:$0xff] %vm438_vm0, %v437_v16  ;;  %v575_v22 = vrot.slane %v567_v17, %v2471_v20  ;;  %v591_v23 = vrot.slane %v583_v19, %v2471_v20  ;;  %v582_v26 = vrot.slane %v568_v18, %v2471_v20  ;;  %2001 = vset.pattern.permute.xlu0 %v2215_v47 }
 0x102   : > { %v598_v27 = vrot.slane %v584_v21, %v2471_v20  ;;  %445 = vst.msk [vmem:[#allocation3 + $0x8] sm:$0xff] %vm443_vm2, %v2214_v34  ;;  %444 = vst.msk [vmem:[#allocation3] sm:$0xff] %vm443_vm2, %v2214_v34  ;;  %2000 = vset.pattern.permute.xlu1 %v2215_v47 }
 0x103   : > { %v599_v24 = vcombine.low %v575_v22, %v591_v23  ;;  %v600_v25 = vcombine.high %v575_v22, %v591_v23  ;;  %446 = vst.msk [vmem:[#allocation3 + $0x10] sm:$0xff] %vm443_vm2, %v2214_v34  ;;  %447 = vst.msk [vmem:[#allocation3 + $0x18] sm:$0xff] %vm443_vm2, %v2214_v34 }
 0x104   : > { %v601_v30 = vcombine.low %v582_v26, %v598_v27  ;;  %v602_v31 = vcombine.high %v582_v26, %v598_v27 }
 0x105   : > { %1877 = vmatpush3.xpose.msk.msra.mxu0 %vm438_vm0, %v599_v24  ;;  %1882 = vmatpush3.xpose.msk.msra.mxu1 %vm438_vm0, %v600_v25 }
 0x106   : > { %1886 = vmatprep.subr.mxu0 %v2210_v2  ;;  %1891 = vmatprep.subr.mxu1 %v2210_v2 }
 0x107   : > { %v750_v28 = vld [vmem:[#allocation2] sm:$0xff]  ;;  %v751_v29 = vld [vmem:[#allocation2 + $0x8] sm:$0xff] }
 0x108   : > { %1879 = vmatmul.mubr.msk.f32.vlgmr.msra.gmra.mrb[0].mxu0 %vm438_vm0, %v750_v28  ;;  %1884 = vmatmul.mubr.msk.f32.vlgmr.msra.gmra.mrb[0].mxu1 %vm438_vm0, %v751_v29  ;;  %v752_v32 = vld [vmem:[#allocation2 + $0x10] sm:$0xff]  ;;  %v753_v33 = vld [vmem:[#allocation2 + $0x18] sm:$0xff] }
 0x109   : > { %1887 = vmatpush3.xpose.msk.msra.mxu0 %vm438_vm0, %v601_v30  ;;  %1892 = vmatpush3.xpose.msk.msra.mxu1 %vm438_vm0, %v602_v31  ;;  %v2551_v48 = vld [vmem:[#allocation3 + $0x8] sm:$0xff]  ;;  %v2553_v49 = vld [vmem:[#allocation3] sm:$0xff] }
 0x10a   : > { %1888 = vmatprep.mubr.msk.f32.mxu0 %vm2211_vm1, %v2210_v2  ;;  %1893 = vmatprep.mubr.msk.f32.mxu1 %vm2211_vm1, %v2210_v2  ;;  %v2561_v54 = vld [vmem:[#allocation3 + $0x10] sm:$0xff]  ;;  %v2577_v60 = vld [vmem:[#allocation3 + $0x18] sm:$0xff] }
 0x10b   : > { %1896 = vmatprep.subr.mxu0 %v2210_v2  ;;  %1901 = vmatprep.subr.mxu1 %v2210_v2 }
 0x10c   : > { %1889 = vmatmul.mubr.msk.f32.vlgmr.msra.gmra.mrb[2].mxu0 %vm438_vm0, %v752_v32  ;;  %1894 = vmatmul.mubr.msk.f32.vlgmr.msra.gmra.mrb[2].mxu1 %vm438_vm0, %v753_v33 }
 0x10d   : > { %1898 = vmatprep.mubr.msk.f32.mxu0 %vm2211_vm1, %v2210_v2  ;;  %1903 = vmatprep.mubr.msk.f32.mxu1 %vm2211_vm1, %v2210_v2 }
 0x1db   : > { %v827_v35 = vpop.f32.mrb[0].mxu0  ;;  %v903_v36 = vpop.f32.mrb[0].mxu1 }
 0x1dc   : > { %v1880_v37 = vpop.f32.mrb[1].mxu0  ;;  %v1885_v38 = vpop.f32.mrb[1].mxu1  ;;  %v1066_v39 = vsel %vm438_vm0, %v903_v36, -inf  ;;  %v1063_v40 = vsel %vm438_vm0, %v827_v35, -inf }
 0x1dd   : > { %1067 = vmax.xlane.f32.xlu1 %v1066_v39  ;;  %1064 = vmax.xlane.f32.xlu0 %v1063_v40 }
 0x1df   : > { %v2543_v41 = vpop.f32.mrb[2].mxu0  ;;  %v2545_v42 = vpop.f32.mrb[2].mxu1 }
 0x1e0   : > { %v1890_v43 = vpop.f32.mrb[3].mxu0  ;;  %v1895_v44 = vpop.f32.mrb[3].mxu1  ;;  %v1069_v45 = vsel %vm438_vm0, %v2543_v41, -inf  ;;  %v1072_v46 = vsel %vm438_vm0, %v2545_v42, -inf }
 0x1e1   : > { %1070 = vmax.xlane.f32.xlu0 %v1069_v45 }
 0x1e5   : > { %1073 = vmax.xlane.f32.xlu0 %v1072_v46 }
 0x26a   : > { %v1068_v50 = vpop.xlane.xlu1 %1067  ;;  %v1065_v51 = vpop.xlane.xlu0 %1064 }
 0x26b   : > { %v2556_v52 = vmax.f32 %v2551_v48, %v1068_v50  ;;  %v2559_v53 = vmax.f32 %v2553_v49, %v1065_v51 }
 0x26d   : > { %v1080_v55 = vsub.f32 %v2551_v48, %v2556_v52  ;;  %1481 = vst.msk [vmem:[#allocation3 + $0x8] sm:$0xff] %vm443_vm2, %v2556_v52  ;;  %v1079_v56 = vsub.f32 %v2553_v49, %v2559_v53  ;;  %1480 = vst.msk [vmem:[#allocation3] sm:$0xff] %vm443_vm2, %v2559_v53  ;;  %1093 = vperm.xlu1 %2000, %v2559_v53   ;;  %1098 = vperm.xlu0 %2001, %v2556_v52  }
 0x26e   : > { %v1071_v57 = vpop.xlane.xlu0 %1070 }
 0x26f   : > { %v2575_v59 = vmax.f32 %v2561_v54, %v1071_v57 }
 0x271   : > { %v1081_v61 = vsub.f32 %v2561_v54, %v2575_v59  ;;  %1482 = vst.msk [vmem:[#allocation3 + $0x10] sm:$0xff] %vm443_vm2, %v2575_v59  ;;  %605 = vrot.lane.b32.xlu1 %v603_v58, %s2208_s20 }
 0x272   : > { %v1074_v62 = vpop.xlane.xlu0 %1073 }
 0x273   : > { %v2585_v63 = vmax.f32 %v2577_v60, %v1074_v62  ;;  %v1083_v62 = vmul.f32 1.442695, %v1079_v56 }
 0x275   : > { %v1082_v0 = vsub.f32 %v2577_v60, %v2585_v63  ;;  %1483 = vst.msk [vmem:[#allocation3 + $0x18] sm:$0xff] %vm443_vm2, %v2585_v63  ;;  %608 = vrot.lane.b32.xlu1 %v603_v58, %s2209_s10 }
 0x279   : > { %611 = vrot.lane.b32.xlu1 %v603_v58, %s2207_s7 }
 0x27d   : > { %1103 = vperm.xlu1 %2000, %v2575_v59  }
 0x281   : > { %1108 = vperm.xlu1 %2000, %v2585_v63  }
 0x2ec   : > { %v1094_v1 = vpop.permute.xlu1 %1093  ;;  %v1099_v3 = vpop.permute.xlu0 %1098 }
 0x2ed   : > { %v1111_v4 = vsub.f32 %v827_v35, %v1094_v1  ;;  %v1112_v5 = vsub.f32 %v903_v36, %v1099_v3 }
 0x2ef   : > { %v1115_v6 = vmul.f32 1.442695, %v1111_v4  ;;  %v1117_v7 = vmul.f32 1.442695, %v1112_v5 }
 0x2f0   : > { %v606_v8 = vpop.permute.xlu1 %605 }
 0x2f1   : > { %2002 = vpow2.f32 %v1115_v6 }
 0x2f2   : > { %2004 = vpow2.f32 %v1117_v7  ;;  %v1089_v7 = vmul.f32 1.442695, %v1082_v0 }
 0x2f4   : > { %v609_v9 = vpop.permute.xlu1 %608 }
 0x2f5   : > { %v614_v10 = vcombine.low %v603_v58, %v609_v9  ;;  %v615_v11 = vcombine.high %v603_v58, %v609_v9  ;;  %v1085_v9 = vmul.f32 1.442695, %v1080_v55 }
 0x2f7   : > { %v622_v17 = vrot.slane %v614_v10, %v2469_v13  ;;  %v629_v18 = vrot.slane %v615_v11, %v2469_v13  ;;  %v1087_v11 = vmul.f32 1.442695, %v1081_v61  ;;  %v1125_v61 = vld [vmem:[#allocation4 + $0x10] sm:$0xff] }
 0x2f8   : > { %v612_v12 = vpop.permute.xlu1 %611 }
 0x2f9   : > { %v630_v14 = vcombine.low %v606_v8, %v612_v12  ;;  %v631_v15 = vcombine.high %v606_v8, %v612_v12 }
 0x2fb   : > { %v2003_v16 = vpop.eup %2002  ;;  %v638_v19 = vrot.slane %v630_v14, %v2469_v13  ;;  %v645_v21 = vrot.slane %v631_v15, %v2469_v13  ;;  %v1123_v14 = vld [vmem:[#allocation4] sm:$0xff]  ;;  %v1124_v15 = vld [vmem:[#allocation4 + $0x8] sm:$0xff] }
 0x2fc   : > { %v2005_v22 = vpop.eup %2004  ;;  %v1104_v23 = vpop.permute.xlu1 %1103  ;;  %v1131_v24 = vsel %vm438_vm0, %v2003_v16, 0.0 }
 0x2fd   : > { %v646_v25 = vcombine.low %v622_v17, %v638_v19  ;;  %v647_v26 = vcombine.high %v622_v17, %v638_v19  ;;  %v662_v27 = vcombine.low %v629_v18, %v645_v21  ;;  %v663_v28 = vcombine.high %v629_v18, %v645_v21  ;;  %1132 = vadd.xlane.f32.xlu1 %v1131_v24 }
 0x2fe   : > { %v1113_v29 = vsub.f32 %v2543_v41, %v1104_v23  ;;  %v1134_v30 = vsel %vm438_vm0, %v2005_v22, 0.0 }
 0x2ff   : > { %v654_v31 = vrot.slane %v646_v25, %v2471_v20  ;;  %v661_v32 = vrot.slane %v647_v26, %v2471_v20  ;;  %v670_v33 = vrot.slane %v662_v27, %v2471_v20  ;;  %v677_v34 = vrot.slane %v663_v28, %v2471_v20  ;;  %1135 = vadd.xlane.f32.xlu0 %v1134_v30 }
 0x300   : > { %v1119_v35 = vmul.f32 1.442695, %v1113_v29  ;;  %v1109_v36 = vpop.permute.xlu1 %1108 }
 0x301   : > { %v682_v37 = vcombine.low %v654_v31, %v661_v32  ;;  %v1840_v38 = vcombine.high %v654_v31, %v661_v32  ;;  %v698_v39 = vcombine.low %v670_v33, %v677_v34  ;;  %v1841_v40 = vcombine.high %v670_v33, %v677_v34 }
 0x302   : > { %2006 = vpow2.f32 %v1119_v35  ;;  %v1114_v41 = vsub.f32 %v2545_v42, %v1109_v36  ;;  %v1152_v35 = vld [vmem:[#allocation5] sm:$0xff]  ;;  %v1153_v36 = vld [vmem:[#allocation5 + $0x8] sm:$0xff] }
 0x303   : > { %v689_v43 = vrot.slane %v682_v37, %v2469_v13  ;;  %v697_v44 = vrot.slane %v1840_v38, %v2469_v13  ;;  %v705_v45 = vrot.slane %v698_v39, %v2469_v13  ;;  %v713_v46 = vrot.slane %v1841_v40, %v2469_v13 }
 0x304   : > { %v1121_v47 = vmul.f32 1.442695, %v1114_v41  ;;  %v1154_v41 = vld [vmem:[#allocation5 + $0x10] sm:$0xff] }
 0x305   : > { %v714_v50 = vcombine.low %v689_v43, %v697_v44  ;;  %v730_v51 = vcombine.low %v705_v45, %v713_v46  ;;  %v715_v57 = vcombine.high %v689_v43, %v697_v44  ;;  %v731_v58 = vcombine.high %v705_v45, %v713_v46  ;;  %v1155_v45 = vld [vmem:[#allocation5 + $0x18] sm:$0xff] }
 0x306   : > { %2008 = vpow2.f32 %v1121_v47 }
 0x307   : > { %v722_v42 = vrot.slane %v714_v50, %v2471_v20  ;;  %v738_v1 = vrot.slane %v730_v51, %v2471_v20  ;;  %v729_v3 = vrot.slane %v715_v57, %v2471_v20  ;;  %v745_v4 = vrot.slane %v731_v58, %v2471_v20 }
 0x308   : > { %2010 = vpow2.f32 %v1083_v62 }
 0x309   : > { %v746_v5 = vcombine.low %v722_v42, %v738_v1  ;;  %v747_v6 = vcombine.high %v722_v42, %v738_v1  ;;  %v748_v53 = vcombine.low %v729_v3, %v745_v4  ;;  %v749_v8 = vcombine.high %v729_v3, %v745_v4 }
 0x30a   : > { %2012 = vpow2.f32 %v1089_v7 }
 0x30b   : > { %1897 = vmatpush3.msra.mxu0 %v746_v5  ;;  %1902 = vmatpush3.msra.mxu1 %v747_v6  ;;  %2014 = vpow2.f32 %v1085_v9 }
 0x30c   : > { %v2007_v49 = vpop.eup %2006  ;;  %1899 = vmatmul.mubr.msk.f32.vlgmr.msra.gmra.mrb[4].mxu0 %vm438_vm0, %v2003_v16  ;;  %1904 = vmatmul.mubr.msk.f32.vlgmr.msra.gmra.mrb[4].mxu1 %vm438_vm0, %v2005_v22  ;;  %2016 = vpow2.f32 %v1087_v11  ;;  %v1126_v22 = vld [vmem:[#allocation4 + $0x18] sm:$0xff] }
 0x30d   : > { %1906 = vmatprep.subr.mxu0 %v2210_v2  ;;  %1911 = vmatprep.subr.mxu1 %v2210_v2  ;;  %v1137_v56 = vsel %vm438_vm0, %v2007_v49, 0.0 }
 0x30e   : > { %1907 = vmatpush3.msra.mxu0 %v748_v53  ;;  %1138 = vadd.xlane.f32.xlu1 %v1137_v56 }
 0x30f   : > { %1912 = vmatpush3.msra.mxu1 %v749_v8  ;;  %1908 = vmatprep.mubr.msk.f32.mxu0 %vm2211_vm1, %v2210_v2 }
 0x310   : > { %v2009_v60 = vpop.eup %2008  ;;  %1913 = vmatprep.mubr.msk.f32.mxu1 %vm2211_vm1, %v2210_v2  ;;  %1909 = vmatmul.mubr.msk.f32.vlgmr.msra.gmra.mrb[6].mxu0 %vm438_vm0, %v2007_v49 }
 0x311   : > { %1914 = vmatmul.mubr.msk.f32.vlgmr.msra.gmra.mrb[6].mxu1 %vm438_vm0, %v2009_v60  ;;  %v1140_v63 = vsel %vm438_vm0, %v2009_v60, 0.0 }
 0x312   : > { %1141 = vadd.xlane.f32.xlu1 %v1140_v63  ;;  %v2011_v0 = vpop.eup %2010 }
 0x313   : > { %v1127_v16 = vmul.f32 %v2011_v0, %v1123_v14 }
 0x314   : > { %v2013_v10 = vpop.eup %2012 }
 0x315   : > { %1158 = vperm.xlu0 %2001, %v2011_v0   ;;  %v2015_v2 = vpop.eup %2014  ;;  %v1130_v24 = vmul.f32 %v2013_v10, %v1126_v22 }
 0x316   : > { %v2017_v12 = vpop.eup %2016  ;;  %v1128_v48 = vmul.f32 %v2015_v2, %v1124_v15 }
 0x317   : > { %v1129_v19 = vmul.f32 %v2017_v12, %v1125_v61 }
 0x319   : > { %1173 = vperm.xlu0 %2001, %v2013_v10  }
 0x323   : > { %1163 = vperm.xlu1 %2000, %v2015_v2  }
 0x327   : > { %1168 = vperm.xlu1 %2000, %v2017_v12  }
 0x38a   : > { %v1133_v17 = vpop.xlane.xlu1 %1132 }
 0x38b   : > { %v1143_v18 = vadd.f32 %v1133_v17, %v1127_v16 }
 0x38c   : > { %v1136_v52 = vpop.xlane.xlu0 %1135 }
 0x38d   : > { %1148 = vst.msk [vmem:[#allocation4] sm:$0xff] %vm443_vm2, %v1143_v18  ;;  %v1144_v55 = vadd.f32 %v1136_v52, %v1128_v48 }
 0x38f   : > { %1149 = vst.msk [vmem:[#allocation4 + $0x8] sm:$0xff] %vm443_vm2, %v1144_v55 }
 0x394   : > { %v1487_v54 = vld [vmem:[#allocation4] sm:$0xff]  ;;  %v1159_v33 = vpop.permute.xlu0 %1158 }
 0x395   : > { %2018 = vrcp.f32 %v1487_v54  ;;  %v1176_v37 = vmul.f32 %v1159_v33, %v1152_v35 }
 0x396   : > { %v1488_v59 = vld [vmem:[#allocation4 + $0x8] sm:$0xff] }
 0x397   : > { %2020 = vrcp.f32 %v1488_v59 }
 0x398   : > { %v1174_v38 = vpop.permute.xlu0 %1173 }
 0x399   : > { %v1179_v58 = vmul.f32 %v1174_v38, %v1155_v45 }
 0x39b   : > { %v1139_v21 = vpop.xlane.xlu1 %1138 }
 0x39c   : > { %v1145_v23 = vadd.f32 %v1139_v21, %v1129_v19 }
 0x39e   : > { %1150 = vst.msk [vmem:[#allocation4 + $0x10] sm:$0xff] %vm443_vm2, %v1145_v23 }
 0x39f   : > { %v2019_v25 = vpop.eup %2018  ;;  %v1142_v26 = vpop.xlane.xlu1 %1141 }
 0x3a0   : > { %v1146_v27 = vadd.f32 %v1142_v26, %v1130_v24  ;;  %1501 = vperm.xlu1 %2000, %v2019_v25  }
 0x3a1   : > { %v2021_v28 = vpop.eup %2020 }
 0x3a2   : > { %1151 = vst.msk [vmem:[#allocation4 + $0x18] sm:$0xff] %vm443_vm2, %v1146_v27  ;;  %1506 = vperm.xlu0 %2001, %v2021_v28  }
 0x3a3   : > { %v1164_v34 = vpop.permute.xlu1 %1163 }
 0x3a4   : > { %v1177_v39 = vmul.f32 %v1164_v34, %v1153_v36 }
 0x3a5   : > { %v1489_v29 = vld [vmem:[#allocation4 + $0x10] sm:$0xff] }
 0x3a6   : > { %2022 = vrcp.f32 %v1489_v29 }
 0x3a7   : > { %v1169_v40 = vpop.permute.xlu1 %1168 }
 0x3a8   : > { %v1178_v57 = vmul.f32 %v1169_v40, %v1154_v41 }
 0x3a9   : > { %v1490_v30 = vld [vmem:[#allocation4 + $0x18] sm:$0xff] }
 0x3aa   : > { %2024 = vrcp.f32 %v1490_v30 }
 0x3b0   : > { %v2023_v31 = vpop.eup %2022 }
 0x3b1   : > { %1511 = vperm.xlu1 %2000, %v2023_v31  }
 0x3b4   : > { %v2025_v32 = vpop.eup %2024 }
 0x3b5   : > { %1516 = vperm.xlu0 %2001, %v2025_v32  }
 0x3df   : > { %v1249_v43 = vpop.f32.mrb[4].mxu0  ;;  %v1322_v44 = vpop.f32.mrb[4].mxu1 }
 0x3e0   : > { %v1472_v46 = vadd.f32 %v1249_v43, %v1176_v37  ;;  %v1473_v47 = vadd.f32 %v1322_v44, %v1177_v39  ;;  %v1900_v50 = vpop.f32.mrb[5].mxu0  ;;  %v1905_v51 = vpop.f32.mrb[5].mxu1 }
 0x3e2   : > { %1476 = vst.msk [vmem:[#allocation5] sm:$0xff] %vm438_vm0, %v1472_v46  ;;  %1477 = vst.msk [vmem:[#allocation5 + $0x8] sm:$0xff] %vm438_vm0, %v1473_v47 }
 0x3e3   : > { %v1395_v62 = vpop.f32.mrb[6].mxu0 }
 0x3e4   : > { %v1474_v42 = vadd.f32 %v1395_v62, %v1178_v57  ;;  %v1468_v1 = vpop.f32.mrb[6].mxu1  ;;  %v1910_v3 = vpop.f32.mrb[7].mxu0 }
 0x3e5   : > { %v1475_v4 = vadd.f32 %v1468_v1, %v1179_v58  ;;  %v1915_v5 = vpop.f32.mrb[7].mxu1 }
 0x3e6   : > { %1478 = vst.msk [vmem:[#allocation5 + $0x10] sm:$0xff] %vm438_vm0, %v1474_v42 }
 0x3e7   : > { %1479 = vst.msk [vmem:[#allocation5 + $0x18] sm:$0xff] %vm438_vm0, %v1475_v4 }
 0x3e9   : > { %v1495_v8 = vld [vmem:[#allocation5] sm:$0xff]  ;;  %v1496_v63 = vld [vmem:[#allocation5 + $0x8] sm:$0xff] }
 0x3ed   : > { %v1497_v53 = vld [vmem:[#allocation5 + $0x10] sm:$0xff] }
 0x3ee   : > { %v1498_v0 = vld [vmem:[#allocation5 + $0x18] sm:$0xff] }
 0x41f   : > { %v1502_v6 = vpop.permute.xlu1 %1501 }
 0x420   : > { %v1519_v60 = vmul.f32 %v1502_v6, %v1495_v8 }
 0x421   : > { %v1507_v7 = vpop.permute.xlu0 %1506 }
 0x422   : > { %v1520_v10 = vmul.f32 %v1507_v7, %v1496_v63 }
 0x430   : > { %v1512_v49 = vpop.permute.xlu1 %1511 }
 0x431   : > { %v1521_v56 = vmul.f32 %v1512_v49, %v1497_v53 }
 0x433   : > { %v1523_v11 = vcombine.low %v1519_v60, %v1521_v56  ;;  %v1524_v2 = vcombine.high %v1519_v60, %v1521_v56 }
 0x434   : > { %v1517_v9 = vpop.permute.xlu0 %1516 }
 0x435   : > { %v1522_v12 = vmul.f32 %v1517_v9, %v1498_v0  ;;  %v1531_v16 = vrot.slane %v1523_v11, %v2469_v13  ;;  %v1538_v17 = vrot.slane %v1524_v2, %v2469_v13 }
 0x437   : > { %v1539_v14 = vcombine.low %v1520_v10, %v1522_v12  ;;  %v1540_v15 = vcombine.high %v1520_v10, %v1522_v12 }
 0x439   : > { %v1547_v18 = vrot.slane %v1539_v14, %v2469_v13  ;;  %v1554_v48 = vrot.slane %v1540_v15, %v2469_v13 }
 0x43b   : > { %v1555_v52 = vcombine.low %v1531_v16, %v1547_v18  ;;  %v1556_v55 = vcombine.high %v1531_v16, %v1547_v18  ;;  %v1571_v54 = vcombine.low %v1538_v17, %v1554_v48  ;;  %v1572_v59 = vcombine.high %v1538_v17, %v1554_v48 }
 0x43d   : > { %v1563_v61 = vrot.slane %v1555_v52, %v2471_v20  ;;  %v1570_v19 = vrot.slane %v1556_v55, %v2471_v20  ;;  %v1579_v21 = vrot.slane %v1571_v54, %v2471_v20  ;;  %v1586_v22 = vrot.slane %v1572_v59, %v2471_v20 }
 0x43f   : > { %v1591_v23 = vcombine.low %v1563_v61, %v1570_v19  ;;  %v1854_v24 = vcombine.high %v1563_v61, %v1570_v19  ;;  %v1607_v25 = vcombine.low %v1579_v21, %v1586_v22  ;;  %v1855_v26 = vcombine.high %v1579_v21, %v1586_v22 }
 0x441   : > { %v1598_v27 = vrot.slane %v1591_v23, %v2469_v13  ;;  %v1606_v28 = vrot.slane %v1854_v24, %v2469_v13  ;;  %v1614_v29 = vrot.slane %v1607_v25, %v2469_v13  ;;  %v1622_v30 = vrot.slane %v1855_v26, %v2469_v13 }
 0x443   : > { %v1624_v31 = vcombine.high %v1598_v27, %v1606_v28  ;;  %v1640_v32 = vcombine.high %v1614_v29, %v1622_v30  ;;  %v1623_v33 = vcombine.low %v1598_v27, %v1606_v28  ;;  %v1639_v34 = vcombine.low %v1614_v29, %v1622_v30 }
 0x445   : > { %v1638_v35 = vrot.slane %v1624_v31, %v2471_v20  ;;  %v1654_v36 = vrot.slane %v1640_v32, %v2471_v20  ;;  %v1631_v37 = vrot.slane %v1623_v33, %v2471_v20  ;;  %v1647_v38 = vrot.slane %v1639_v34, %v2471_v20 }
 0x447   : > { %v1657_v39 = vcombine.low %v1638_v35, %v1654_v36  ;;  %v1656_v40 = vcombine.high %v1631_v37, %v1647_v38  ;;  %v1655_v41 = vcombine.low %v1631_v37, %v1647_v38  ;;  %v1658_v13 = vcombine.high %v1638_v35, %v1654_v36 }
 0x449   : > { %1664 = vrot.lane.b32.xlu0 %v1657_v39, %s2216_s24  ;;  %1660 = vrot.lane.b32.xlu1 %v1656_v40, %s2217_s6 }
 0x44d   : > { %1668 = vrot.lane.b32.xlu1 %v1658_v13, %s2218_s9 }
 0x4bb   : > { %v1661_v43 = vpop.permute.xlu1 %1660  ;;  %v1665_v44 = vpop.permute.xlu0 %1664 }
 0x4bc   : > { %v1671_v45 = vsel %vm438_vm0, %v1655_v41, %v1661_v43 }
 0x4bd   : > { %v1673_v46 = vsel %vm1672_vm3, %v1671_v45, %v1665_v44 }
 0x4bf   : > { %v1669_v20 = vpop.permute.xlu1 %1668 }
 0x4c0   : > { %v1675_v47 = vsel %vm1674_vm4, %v1673_v46, %v1669_v20 }
 0x4c1   : > { %1677 = vst.msk [vmem:[%s286_s28] sm:$0xff] %vm1676_vm5, %v1675_v47 }
 0x4c2   : > { %2129 = shalt.err (!%p2126_p13)
}
 0x4c3   : > { %s2130_s21 = scalar_lea.hbm %s2669_s5, 128  ;;  %s2134_s19 = scalar_lea.hbm %s2721_s3, 256 }
 0x4c4   : > { %p2131_p11 = scmp.ne.s32.totalorder %s2669_s5, %s2130_s21  ;;  %p2135_p7 = scmp.lt.u32.totalorder %s2669_s5, %s2721_s3 }
 0x4c5   : > { %p2136_p3 = scmp.lt.u32.totalorder %s2134_s19, %s2130_s21  ;;  %p2138_p4 = scmp.lt.u32.totalorder %s2130_s21, %s2669_s5 }
 0x4c6   : > { %p2132_p2 = pnand %p2131_p11, %p2744_p10 }
 0x4c7   : > { %p2137_p0 = por %p2136_p3, %p2135_p7 }
 0x4c8   : > { %p2133_p5 = pneg %p2132_p2 }
 0x4c9   : > { %p2139_p12 = por %p2138_p4, %p2137_p0 }
 0x4cb   : > { %p2140_p1 = pnand %p2139_p12, %p2133_p5 }
 0x4cd   : > { %2143 = shalt.err (!%p2140_p1)
}
 0x4ce   : > { %1922 = dma.vmem_to_hbm [thread:$0]  (%p2744_p10), %s2671_s30, 128, %s2669_s5, %s1679_s23  }
 0x4cf PF: > { %s1705_s10 = sand.u32 1, %s2182_s12   ;;  %p2745_p8 = scmp.ne.s32.totalorder %s2734_s27, 0 }
 0x4d0   : > { %p2746_p9 = scmp.ge.s32.totalorder %s2202_s17, 2  ;;  %s1706_s18 = scalar_lea.sflag [#allocation8], %s1705_s10 }
 0x4d2   : > { %p1935_p6 = pnand %p2746_p9, %p2745_p8 }
 0x4d4   : > { %2177 = dma.done.wait (!%p1935_p6), %s1706_s18, 128  }
 0x4d5   : > { %2179 = vsyncadd (!%p1935_p6), %s1706_s18, 4294967168  ;;  %s22_s17 = sadd.s32 1, %s2202_s17   ;;  %s2747_s25 = sld [smem:[#allocation18_spill]] }
 0x4d6   : > { %p19_p13 = scmp.ge.s32.totalorder %s22_s17, 4   ;;  %s2748_s15 = sld [smem:[#allocation16_spill]] }
 0x4d7   : > { %s2749_s16 = sld [smem:[#allocation17_spill]]  ;;  %s2750_s12 = smov %s2186_s13 }
 0x4d8   : > { %s2751_s13 = smov %s2190_s14  ;;  %21 = sbr.rel (!%p19_p13) target bundleno = 10 (0xa), region = 109 }
 0x4db   : > { %s2752_s14 = smov %s2747_s25 }
 0x4df   :  { %1711 = vsyncpa [#allocation7], 1 }
 0x4e0   :  { %1713 = vsyncpa [#allocation7 + $0x1], 1 }
 0x4e1   :  { %1714 = vsyncpa [#allocation10], 1 }
 0x4e2   :  { %1716 = vsyncpa [#allocation10 + $0x1], 1 }
 0x4e3   :  { %1717 = vsyncpa [#allocation8], 1 }
 0x4e4   :  { %1719 = vsyncpa [#allocation8 + $0x1], 1 }

</bundles_post_ra>
